<compile_context>
chip_gen: v6e
topology: v6e:2x2x1
jax: 0.10.0
libtpu: 0.0.40
codegen_flags: <defaults>
</compile_context>

<pallas_src>
import functools

import jax
import jax.numpy as jnp
from jax import lax
from jax.experimental import pallas as pl
from jax.experimental.pallas import tpu as pltpu


def _rrb_kernel(x_ref, w1_ref, b1_ref, w2_ref, b2_ref, w3_ref, o_ref, *, H, W):
    """One (Ce, L) lane-dense block: Ce packed channel rows x (images*H*W) lanes."""
    f32 = jnp.float32
    HW = H * W
    L = x_ref.shape[1]
    hi = lax.Precision.HIGHEST

    x = x_ref[...].astype(f32)                                  # (Ce, L)
    w1 = w1_ref[...].astype(f32)                                # (Ce, Ce)
    b1 = b1_ref[...].astype(f32)                                # (Ce, 1)
    b2 = b2_ref[...].astype(f32)                                # (Ce, 1)

    # Image-local lane coordinates, built once.  Each lane block holds a whole
    # number of images, so (pos mod HW) is the within-image pixel index.
    pos = lax.broadcasted_iota(jnp.int32, (1, L), 1)
    q = (pos & (HW - 1)) if (HW & (HW - 1)) == 0 else (pos % HW)
    col = (q & (W - 1)) if (W & (W - 1)) == 0 else (q % W)

    taps = [(dy, dx) for dy in (-1, 0, 1) for dx in (-1, 0, 1)]

    def tap_mask(dy, dx):
        conds = []
        if dy == -1:
            conds.append(q >= W)
        elif dy == 1:
            conds.append(q < (H - 1) * W)
        if dx == -1:
            conds.append(col >= 1)
        elif dx == 1:
            conds.append(col <= W - 2)
        if not conds:
            return None
        m = conds[0]
        for c in conds[1:]:
            m = jnp.logical_and(m, c)
        return m.astype(f32)                                    # (1, L) 0/1 mask

    # Hoisted: the 8 border masks are shared by both 3x3 convs.
    masks = [tap_mask(dy, dx) for (dy, dx) in taps]

    # ---- conv1x1 + bias -> h  (channel mix on the MXU, f32 accumulate) ------
    h = jnp.dot(w1, x, precision=hi, preferred_element_type=f32) + b1

    def conv3x3(a, w_ref):
        """SAME-padded 3x3 conv of a (Ce, L) tile: 8 full-tile lane rolls (XLU)
        + multiplicative border masks; channel mix as small MXU matmuls."""
        acc = None
        for t, (dy, dx) in enumerate(taps):
            # out[p] needs in[p + dy*W + dx]; roll(x, k)[p] = x[(p - k) mod L]
            shift = (-(dy * W + dx)) % L
            s = pltpu.roll(a, shift=shift, axis=1) if shift else a
            if masks[t] is not None:
                s = s * masks[t]                                # zero out-of-image taps
            wt = w_ref[t].astype(f32)                           # (Ce, Ce): [co, ci]
            d = jnp.dot(wt, s, precision=hi, preferred_element_type=f32)
            acc = d if acc is None else acc + d                 # init from first tap
        return acc

    t_act = jnp.maximum(conv3x3(h, w2_ref) + b2, 0.0)           # relu(conv3x3(h) + b2)
    u = conv3x3(t_act, w3_ref)                                  # conv3x3, bias=False
    o_ref[...] = jnp.maximum(h + u, 0.0).astype(o_ref.dtype)    # relu(h + u)


def _plan_blocks(N, C, HW, itemsize):
    """Pick (P, n_blk): P images packed into the sublane axis (P*C <= 8) and
    n_blk image-groups per lane block (~0.5 MiB input blocks, >= 2 grid steps
    when possible so both v7x TensorCores get work)."""
    P = max(1, 8 // C)
    while P > 1 and (N % P != 0 or N // P < 2):
        P -= 1
    G = N // P                               # packed image-groups
    per_group = P * C * HW * itemsize
    n_blk = max(1, (512 * 1024) // per_group)
    n_blk = min(n_blk, G)
    if G >= 2:
        n_blk = max(1, min(n_blk, G // 2))   # keep >= 2 grid steps (megacore)
    while G % n_blk:
        n_blk -= 1
    if (n_blk * HW) % 128 != 0 and n_blk != G:
        n_blk = G                            # full-extent lane block is always legal
    return P, n_blk


@jax.jit
def rrb_forward(x_nchw, w1, b1, w2, b2, w3):
    """x: [N,C,H,W] (NCHW); w1: [C,C,1,1]; w2,w3: [C,C,3,3]; b1,b2: [C]."""
    N, C, H, W = x_nchw.shape
    HW = H * W
    dtype = x_nchw.dtype

    P, n_blk = _plan_blocks(N, C, HW, x_nchw.dtype.itemsize)
    G = N // P                      # image-groups along the lane axis
    Ce = P * C                      # packed channel rows (sublane axis)
    L = n_blk * HW                  # lanes per block (multiple of 128 or full)

    # ---- pack activations: (N,C,H,W) -> (P*C, G*HW), lane-dense -------------
    x_packed = (x_nchw.reshape(G, P, C, HW)
                .transpose(1, 2, 0, 3)
                .reshape(Ce, G * HW))

    # ---- pack weights (block-diagonal over the P packed images) -------------
    eye = jnp.eye(P, dtype=jnp.float32)
    w1m = jnp.kron(eye, w1[:, :, 0, 0].astype(jnp.float32))         # (Ce, Ce) [co, ci]

    def pack3x3(w):                                                  # OIHW -> (9, Ce, Ce)
        ws = jnp.transpose(w, (2, 3, 0, 1)).reshape(9, C, C).astype(jnp.float32)
        return jnp.einsum("ij,tab->tiajb", eye, ws).reshape(9, Ce, Ce)

    w2s, w3s = pack3x3(w2), pack3x3(w3)
    b1c = jnp.tile(b1.astype(jnp.float32), P).reshape(Ce, 1)
    b2c = jnp.tile(b2.astype(jnp.float32), P).reshape(Ce, 1)

    kernel = functools.partial(_rrb_kernel, H=H, W=W)
    out_packed = pl.pallas_call(
        kernel,
        out_shape=jax.ShapeDtypeStruct((Ce, G * HW), dtype),
        grid_spec=pltpu.PrefetchScalarGridSpec(
            num_scalar_prefetch=0,
            grid=(G // n_blk,),
            in_specs=[
                pl.BlockSpec((Ce, L), lambda n: (0, n)),           # activations
                pl.BlockSpec((Ce, Ce), lambda n: (0, 0)),          # w1
                pl.BlockSpec((Ce, 1), lambda n: (0, 0)),           # b1
                pl.BlockSpec((9, Ce, Ce), lambda n: (0, 0, 0)),    # w2 (per-tap)
                pl.BlockSpec((Ce, 1), lambda n: (0, 0)),           # b2
                pl.BlockSpec((9, Ce, Ce), lambda n: (0, 0, 0)),    # w3 (per-tap)
            ],
            out_specs=pl.BlockSpec((Ce, L), lambda n: (0, n)),
        ),
        compiler_params=pltpu.CompilerParams(
            dimension_semantics=("parallel",)),
    )(x_packed, w1m, b1c, w2s, b2c, w3s)

    # ---- unpack: (P*C, G*HW) -> (N, C, H, W) ---------------------------------
    return (out_packed.reshape(P, C, G, HW)
            .transpose(2, 0, 1, 3)
            .reshape(N, C, H, W))


def rrb_reference(x, w1, b1, w2, b2, w3):
    """Pure-JAX reference in NCHW / OIHW layout (matches PyTorch semantics)."""
    dn = ("NCHW", "OIHW", "NCHW")
    hi = lax.Precision.HIGHEST
    bc = lambda b: b[None, :, None, None]
    conv = lambda a, w: lax.conv_general_dilated(
        a, w, (1, 1), "SAME", dimension_numbers=dn, precision=hi)
    h = conv(x, w1) + bc(b1)
    t = jnp.maximum(conv(h, w2) + bc(b2), 0.0)
    u = conv(t, w3)
    return jnp.maximum(h + u, 0.0)


if __name__ == "__main__":
    # Small deterministic setup consistent with RRB(oc=4): x is NCHW [2,4,16,16].
    N, C, H, W = 2, 4, 16, 16
    key = jax.random.PRNGKey(0)
    kx, k1, kb1, k2, kb2, k3 = jax.random.split(key, 6)

    x = jax.random.normal(kx, (N, C, H, W), jnp.float32)
    # PyTorch conv weights are (OC, IC, kh, kw); biases are (OC,).
    w1 = jax.random.normal(k1, (C, C, 1, 1), jnp.float32) * 0.1
    b1 = jax.random.normal(kb1, (C,), jnp.float32) * 0.1
    w2 = jax.random.normal(k2, (C, C, 3, 3), jnp.float32) * 0.1
    b2 = jax.random.normal(kb2, (C,), jnp.float32) * 0.1
    w3 = jax.random.normal(k3, (C, C, 3, 3), jnp.float32) * 0.1   # bias=False

    out = jax.block_until_ready(rrb_forward(x, w1, b1, w2, b2, w3))
    ref = jax.block_until_ready(rrb_reference(x, w1, b1, w2, b2, w3))

    assert out.shape == (N, C, H, W)
    max_err = float(jnp.max(jnp.abs(out - ref)))
    assert jnp.allclose(out, ref, atol=1e-3, rtol=1e-3), f"max abs err {max_err}"

    print("KERNEL_OK")
</pallas_src>

<mosaic_0001>
module attributes {stable_mosaic.version = 11 : i64} {
  func.func @_rrb_kernel(%arg0: i32, %arg1: memref<4x256xf32, #tpu.memory_space<vmem>>, %arg2: memref<4x4xf32, #tpu.memory_space<vmem>>, %arg3: memref<4x1xf32, #tpu.memory_space<vmem>>, %arg4: memref<9x4x4xf32, #tpu.memory_space<vmem>>, %arg5: memref<4x1xf32, #tpu.memory_space<vmem>>, %arg6: memref<9x4x4xf32, #tpu.memory_space<vmem>>, %arg7: memref<4x256xf32, #tpu.memory_space<vmem>>) attributes {dimension_semantics = [#tpu.dimension_semantics<parallel>], iteration_bounds = array<i64: 2>, scalar_prefetch = 0 : i64, scratch_operands = 0 : i64, tpu.core_type = #tpu.core_type<tc>, window_params = [{transform_indices = @transform_0, window_bounds = array<i64: 4, 256>}, {pipeline_mode = #tpu.pipeline_mode<synchronous>, transform_indices = @transform_1, window_bounds = array<i64: 4, 4>}, {pipeline_mode = #tpu.pipeline_mode<synchronous>, transform_indices = @transform_2, window_bounds = array<i64: 4, 1>}, {pipeline_mode = #tpu.pipeline_mode<synchronous>, transform_indices = @transform_3, window_bounds = array<i64: 9, 4, 4>}, {pipeline_mode = #tpu.pipeline_mode<synchronous>, transform_indices = @transform_4, window_bounds = array<i64: 4, 1>}, {pipeline_mode = #tpu.pipeline_mode<synchronous>, transform_indices = @transform_5, window_bounds = array<i64: 9, 4, 4>}, {transform_indices = @transform_6, window_bounds = array<i64: 4, 256>}]} {
    %c0 = arith.constant 0 : index
    %c0_0 = arith.constant 0 : index
    %0 = vector.load %arg1[%c0, %c0_0] : memref<4x256xf32, #tpu.memory_space<vmem>>, vector<4x256xf32>
    %c0_1 = arith.constant 0 : index
    %c0_2 = arith.constant 0 : index
    %1 = vector.load %arg2[%c0_1, %c0_2] : memref<4x4xf32, #tpu.memory_space<vmem>>, vector<4x4xf32>
    %c0_3 = arith.constant 0 : index
    %c0_4 = arith.constant 0 : index
    %2 = vector.load %arg3[%c0_3, %c0_4] : memref<4x1xf32, #tpu.memory_space<vmem>>, vector<4x1xf32>
    %c0_5 = arith.constant 0 : index
    %c0_6 = arith.constant 0 : index
    %3 = vector.load %arg5[%c0_5, %c0_6] : memref<4x1xf32, #tpu.memory_space<vmem>>, vector<4x1xf32>
    %4 = tpu.iota {dimensions = array<i32: 1>} : vector<1x256xi32>
    %c255_i32 = arith.constant 255 : i32
    %5 = vector.broadcast %c255_i32 : i32 to vector<1x256xi32>
    %6 = arith.andi %4, %5 : vector<1x256xi32>
    %c15_i32 = arith.constant 15 : i32
    %7 = vector.broadcast %c15_i32 : i32 to vector<1x256xi32>
    %8 = arith.andi %6, %7 : vector<1x256xi32>
    %c16_i32 = arith.constant 16 : i32
    %9 = vector.broadcast %c16_i32 : i32 to vector<1x256xi32>
    %10 = arith.cmpi sge, %6, %9 : vector<1x256xi32>
    %c1_i32 = arith.constant 1 : i32
    %11 = vector.broadcast %c1_i32 : i32 to vector<1x256xi32>
    %12 = arith.cmpi sge, %8, %11 : vector<1x256xi32>
    %13 = arith.andi %10, %12 : vector<1x256xi1>
    %14 = arith.extui %13 : vector<1x256xi1> to vector<1x256xi32>
    %15 = arith.sitofp %14 : vector<1x256xi32> to vector<1x256xf32>
    %c16_i32_7 = arith.constant 16 : i32
    %16 = vector.broadcast %c16_i32_7 : i32 to vector<1x256xi32>
    %17 = arith.cmpi sge, %6, %16 : vector<1x256xi32>
    %18 = arith.extui %17 : vector<1x256xi1> to vector<1x256xi32>
    %19 = arith.sitofp %18 : vector<1x256xi32> to vector<1x256xf32>
    %c16_i32_8 = arith.constant 16 : i32
    %20 = vector.broadcast %c16_i32_8 : i32 to vector<1x256xi32>
    %21 = arith.cmpi sge, %6, %20 : vector<1x256xi32>
    %c14_i32 = arith.constant 14 : i32
    %22 = vector.broadcast %c14_i32 : i32 to vector<1x256xi32>
    %23 = arith.cmpi sle, %8, %22 : vector<1x256xi32>
    %24 = arith.andi %21, %23 : vector<1x256xi1>
    %25 = arith.extui %24 : vector<1x256xi1> to vector<1x256xi32>
    %26 = arith.sitofp %25 : vector<1x256xi32> to vector<1x256xf32>
    %c1_i32_9 = arith.constant 1 : i32
    %27 = vector.broadcast %c1_i32_9 : i32 to vector<1x256xi32>
    %28 = arith.cmpi sge, %8, %27 : vector<1x256xi32>
    %29 = arith.extui %28 : vector<1x256xi1> to vector<1x256xi32>
    %30 = arith.sitofp %29 : vector<1x256xi32> to vector<1x256xf32>
    %c14_i32_10 = arith.constant 14 : i32
    %31 = vector.broadcast %c14_i32_10 : i32 to vector<1x256xi32>
    %32 = arith.cmpi sle, %8, %31 : vector<1x256xi32>
    %33 = arith.extui %32 : vector<1x256xi1> to vector<1x256xi32>
    %34 = arith.sitofp %33 : vector<1x256xi32> to vector<1x256xf32>
    %c240_i32 = arith.constant 240 : i32
    %35 = vector.broadcast %c240_i32 : i32 to vector<1x256xi32>
    %36 = arith.cmpi slt, %6, %35 : vector<1x256xi32>
    %c1_i32_11 = arith.constant 1 : i32
    %37 = vector.broadcast %c1_i32_11 : i32 to vector<1x256xi32>
    %38 = arith.cmpi sge, %8, %37 : vector<1x256xi32>
    %39 = arith.andi %36, %38 : vector<1x256xi1>
    %40 = arith.extui %39 : vector<1x256xi1> to vector<1x256xi32>
    %41 = arith.sitofp %40 : vector<1x256xi32> to vector<1x256xf32>
    %c240_i32_12 = arith.constant 240 : i32
    %42 = vector.broadcast %c240_i32_12 : i32 to vector<1x256xi32>
    %43 = arith.cmpi slt, %6, %42 : vector<1x256xi32>
    %44 = arith.extui %43 : vector<1x256xi1> to vector<1x256xi32>
    %45 = arith.sitofp %44 : vector<1x256xi32> to vector<1x256xf32>
    %c240_i32_13 = arith.constant 240 : i32
    %46 = vector.broadcast %c240_i32_13 : i32 to vector<1x256xi32>
    %47 = arith.cmpi slt, %6, %46 : vector<1x256xi32>
    %c14_i32_14 = arith.constant 14 : i32
    %48 = vector.broadcast %c14_i32_14 : i32 to vector<1x256xi32>
    %49 = arith.cmpi sle, %8, %48 : vector<1x256xi32>
    %50 = arith.andi %47, %49 : vector<1x256xi1>
    %51 = arith.extui %50 : vector<1x256xi1> to vector<1x256xi32>
    %52 = arith.sitofp %51 : vector<1x256xi32> to vector<1x256xf32>
    %cst = arith.constant dense<0.000000e+00> : vector<4x256xf32>
    %53 = tpu.matmul %1, %0, %cst {dimension_numbers = #tpu.dot_dimension_numbers<[1], [0], [0], [1], [0, 0, 1, 1], [], []>, precision = #tpu.contract_precision<fp32>} : vector<4x4xf32>, vector<4x256xf32>, vector<4x256xf32> -> vector<4x256xf32>
    %54 = vector.broadcast %2 : vector<4x1xf32> to vector<4x256xf32>
    %55 = arith.addf %53, %54 : vector<4x256xf32>
    %c17_i32 = arith.constant 17 : i32
    %56 = tpu.dynamic_rotate %55 by %c17_i32 dim 1 : vector<4x256xf32>, i32 -> vector<4x256xf32>
    %57 = vector.broadcast %15 : vector<1x256xf32> to vector<4x256xf32>
    %58 = arith.mulf %56, %57 : vector<4x256xf32>
    %c0_15 = arith.constant 0 : index
    %c0_16 = arith.constant 0 : index
    %c0_17 = arith.constant 0 : index
    %59 = vector.load %arg4[%c0_15, %c0_16, %c0_17] : memref<9x4x4xf32, #tpu.memory_space<vmem>>, vector<1x4x4xf32>
    %60 = vector.shape_cast %59 : vector<1x4x4xf32> to vector<4x4xf32>
    %cst_18 = arith.constant dense<0.000000e+00> : vector<4x256xf32>
    %61 = tpu.matmul %60, %58, %cst_18 {dimension_numbers = #tpu.dot_dimension_numbers<[1], [0], [0], [1], [0, 0, 1, 1], [], []>, precision = #tpu.contract_precision<fp32>} : vector<4x4xf32>, vector<4x256xf32>, vector<4x256xf32> -> vector<4x256xf32>
    %c16_i32_19 = arith.constant 16 : i32
    %62 = tpu.dynamic_rotate %55 by %c16_i32_19 dim 1 : vector<4x256xf32>, i32 -> vector<4x256xf32>
    %63 = vector.broadcast %19 : vector<1x256xf32> to vector<4x256xf32>
    %64 = arith.mulf %62, %63 : vector<4x256xf32>
    %c1 = arith.constant 1 : index
    %c0_20 = arith.constant 0 : index
    %c0_21 = arith.constant 0 : index
    %65 = vector.load %arg4[%c1, %c0_20, %c0_21] : memref<9x4x4xf32, #tpu.memory_space<vmem>>, vector<1x4x4xf32>
    %66 = vector.shape_cast %65 : vector<1x4x4xf32> to vector<4x4xf32>
    %cst_22 = arith.constant dense<0.000000e+00> : vector<4x256xf32>
    %67 = tpu.matmul %66, %64, %cst_22 {dimension_numbers = #tpu.dot_dimension_numbers<[1], [0], [0], [1], [0, 0, 1, 1], [], []>, precision = #tpu.contract_precision<fp32>} : vector<4x4xf32>, vector<4x256xf32>, vector<4x256xf32> -> vector<4x256xf32>
    %68 = arith.addf %61, %67 : vector<4x256xf32>
    %c15_i32_23 = arith.constant 15 : i32
    %69 = tpu.dynamic_rotate %55 by %c15_i32_23 dim 1 : vector<4x256xf32>, i32 -> vector<4x256xf32>
    %70 = vector.broadcast %26 : vector<1x256xf32> to vector<4x256xf32>
    %71 = arith.mulf %69, %70 : vector<4x256xf32>
    %c2 = arith.constant 2 : index
    %c0_24 = arith.constant 0 : index
    %c0_25 = arith.constant 0 : index
    %72 = vector.load %arg4[%c2, %c0_24, %c0_25] : memref<9x4x4xf32, #tpu.memory_space<vmem>>, vector<1x4x4xf32>
    %73 = vector.shape_cast %72 : vector<1x4x4xf32> to vector<4x4xf32>
    %cst_26 = arith.constant dense<0.000000e+00> : vector<4x256xf32>
    %74 = tpu.matmul %73, %71, %cst_26 {dimension_numbers = #tpu.dot_dimension_numbers<[1], [0], [0], [1], [0, 0, 1, 1], [], []>, precision = #tpu.contract_precision<fp32>} : vector<4x4xf32>, vector<4x256xf32>, vector<4x256xf32> -> vector<4x256xf32>
    %75 = arith.addf %68, %74 : vector<4x256xf32>
    %c1_i32_27 = arith.constant 1 : i32
    %76 = tpu.dynamic_rotate %55 by %c1_i32_27 dim 1 : vector<4x256xf32>, i32 -> vector<4x256xf32>
    %77 = vector.broadcast %30 : vector<1x256xf32> to vector<4x256xf32>
    %78 = arith.mulf %76, %77 : vector<4x256xf32>
    %c3 = arith.constant 3 : index
    %c0_28 = arith.constant 0 : index
    %c0_29 = arith.constant 0 : index
    %79 = vector.load %arg4[%c3, %c0_28, %c0_29] : memref<9x4x4xf32, #tpu.memory_space<vmem>>, vector<1x4x4xf32>
    %80 = vector.shape_cast %79 : vector<1x4x4xf32> to vector<4x4xf32>
    %cst_30 = arith.constant dense<0.000000e+00> : vector<4x256xf32>
    %81 = tpu.matmul %80, %78, %cst_30 {dimension_numbers = #tpu.dot_dimension_numbers<[1], [0], [0], [1], [0, 0, 1, 1], [], []>, precision = #tpu.contract_precision<fp32>} : vector<4x4xf32>, vector<4x256xf32>, vector<4x256xf32> -> vector<4x256xf32>
    %82 = arith.addf %75, %81 : vector<4x256xf32>
    %c4 = arith.constant 4 : index
    %c0_31 = arith.constant 0 : index
    %c0_32 = arith.constant 0 : index
    %83 = vector.load %arg4[%c4, %c0_31, %c0_32] : memref<9x4x4xf32, #tpu.memory_space<vmem>>, vector<1x4x4xf32>
    %84 = vector.shape_cast %83 : vector<1x4x4xf32> to vector<4x4xf32>
    %cst_33 = arith.constant dense<0.000000e+00> : vector<4x256xf32>
    %85 = tpu.matmul %84, %55, %cst_33 {dimension_numbers = #tpu.dot_dimension_numbers<[1], [0], [0], [1], [0, 0, 1, 1], [], []>, precision = #tpu.contract_precision<fp32>} : vector<4x4xf32>, vector<4x256xf32>, vector<4x256xf32> -> vector<4x256xf32>
    %86 = arith.addf %82, %85 : vector<4x256xf32>
    %c255_i32_34 = arith.constant 255 : i32
    %87 = tpu.dynamic_rotate %55 by %c255_i32_34 dim 1 : vector<4x256xf32>, i32 -> vector<4x256xf32>
    %88 = vector.broadcast %34 : vector<1x256xf32> to vector<4x256xf32>
    %89 = arith.mulf %87, %88 : vector<4x256xf32>
    %c5 = arith.constant 5 : index
    %c0_35 = arith.constant 0 : index
    %c0_36 = arith.constant 0 : index
    %90 = vector.load %arg4[%c5, %c0_35, %c0_36] : memref<9x4x4xf32, #tpu.memory_space<vmem>>, vector<1x4x4xf32>
    %91 = vector.shape_cast %90 : vector<1x4x4xf32> to vector<4x4xf32>
    %cst_37 = arith.constant dense<0.000000e+00> : vector<4x256xf32>
    %92 = tpu.matmul %91, %89, %cst_37 {dimension_numbers = #tpu.dot_dimension_numbers<[1], [0], [0], [1], [0, 0, 1, 1], [], []>, precision = #tpu.contract_precision<fp32>} : vector<4x4xf32>, vector<4x256xf32>, vector<4x256xf32> -> vector<4x256xf32>
    %93 = arith.addf %86, %92 : vector<4x256xf32>
    %c241_i32 = arith.constant 241 : i32
    %94 = tpu.dynamic_rotate %55 by %c241_i32 dim 1 : vector<4x256xf32>, i32 -> vector<4x256xf32>
    %95 = vector.broadcast %41 : vector<1x256xf32> to vector<4x256xf32>
    %96 = arith.mulf %94, %95 : vector<4x256xf32>
    %c6 = arith.constant 6 : index
    %c0_38 = arith.constant 0 : index
    %c0_39 = arith.constant 0 : index
    %97 = vector.load %arg4[%c6, %c0_38, %c0_39] : memref<9x4x4xf32, #tpu.memory_space<vmem>>, vector<1x4x4xf32>
    %98 = vector.shape_cast %97 : vector<1x4x4xf32> to vector<4x4xf32>
    %cst_40 = arith.constant dense<0.000000e+00> : vector<4x256xf32>
    %99 = tpu.matmul %98, %96, %cst_40 {dimension_numbers = #tpu.dot_dimension_numbers<[1], [0], [0], [1], [0, 0, 1, 1], [], []>, precision = #tpu.contract_precision<fp32>} : vector<4x4xf32>, vector<4x256xf32>, vector<4x256xf32> -> vector<4x256xf32>
    %100 = arith.addf %93, %99 : vector<4x256xf32>
    %c240_i32_41 = arith.constant 240 : i32
    %101 = tpu.dynamic_rotate %55 by %c240_i32_41 dim 1 : vector<4x256xf32>, i32 -> vector<4x256xf32>
    %102 = vector.broadcast %45 : vector<1x256xf32> to vector<4x256xf32>
    %103 = arith.mulf %101, %102 : vector<4x256xf32>
    %c7 = arith.constant 7 : index
    %c0_42 = arith.constant 0 : index
    %c0_43 = arith.constant 0 : index
    %104 = vector.load %arg4[%c7, %c0_42, %c0_43] : memref<9x4x4xf32, #tpu.memory_space<vmem>>, vector<1x4x4xf32>
    %105 = vector.shape_cast %104 : vector<1x4x4xf32> to vector<4x4xf32>
    %cst_44 = arith.constant dense<0.000000e+00> : vector<4x256xf32>
    %106 = tpu.matmul %105, %103, %cst_44 {dimension_numbers = #tpu.dot_dimension_numbers<[1], [0], [0], [1], [0, 0, 1, 1], [], []>, precision = #tpu.contract_precision<fp32>} : vector<4x4xf32>, vector<4x256xf32>, vector<4x256xf32> -> vector<4x256xf32>
    %107 = arith.addf %100, %106 : vector<4x256xf32>
    %c239_i32 = arith.constant 239 : i32
    %108 = tpu.dynamic_rotate %55 by %c239_i32 dim 1 : vector<4x256xf32>, i32 -> vector<4x256xf32>
    %109 = vector.broadcast %52 : vector<1x256xf32> to vector<4x256xf32>
    %110 = arith.mulf %108, %109 : vector<4x256xf32>
    %c8 = arith.constant 8 : index
    %c0_45 = arith.constant 0 : index
    %c0_46 = arith.constant 0 : index
    %111 = vector.load %arg4[%c8, %c0_45, %c0_46] : memref<9x4x4xf32, #tpu.memory_space<vmem>>, vector<1x4x4xf32>
    %112 = vector.shape_cast %111 : vector<1x4x4xf32> to vector<4x4xf32>
    %cst_47 = arith.constant dense<0.000000e+00> : vector<4x256xf32>
    %113 = tpu.matmul %112, %110, %cst_47 {dimension_numbers = #tpu.dot_dimension_numbers<[1], [0], [0], [1], [0, 0, 1, 1], [], []>, precision = #tpu.contract_precision<fp32>} : vector<4x4xf32>, vector<4x256xf32>, vector<4x256xf32> -> vector<4x256xf32>
    %114 = arith.addf %107, %113 : vector<4x256xf32>
    %115 = vector.broadcast %3 : vector<4x1xf32> to vector<4x256xf32>
    %116 = arith.addf %114, %115 : vector<4x256xf32>
    %cst_48 = arith.constant 0.000000e+00 : f32
    %117 = vector.broadcast %cst_48 : f32 to vector<4x256xf32>
    %118 = arith.maximumf %116, %117 : vector<4x256xf32>
    %c17_i32_49 = arith.constant 17 : i32
    %119 = tpu.dynamic_rotate %118 by %c17_i32_49 dim 1 : vector<4x256xf32>, i32 -> vector<4x256xf32>
    %120 = vector.broadcast %15 : vector<1x256xf32> to vector<4x256xf32>
    %121 = arith.mulf %119, %120 : vector<4x256xf32>
    %c0_50 = arith.constant 0 : index
    %c0_51 = arith.constant 0 : index
    %c0_52 = arith.constant 0 : index
    %122 = vector.load %arg6[%c0_50, %c0_51, %c0_52] : memref<9x4x4xf32, #tpu.memory_space<vmem>>, vector<1x4x4xf32>
    %123 = vector.shape_cast %122 : vector<1x4x4xf32> to vector<4x4xf32>
    %cst_53 = arith.constant dense<0.000000e+00> : vector<4x256xf32>
    %124 = tpu.matmul %123, %121, %cst_53 {dimension_numbers = #tpu.dot_dimension_numbers<[1], [0], [0], [1], [0, 0, 1, 1], [], []>, precision = #tpu.contract_precision<fp32>} : vector<4x4xf32>, vector<4x256xf32>, vector<4x256xf32> -> vector<4x256xf32>
    %c16_i32_54 = arith.constant 16 : i32
    %125 = tpu.dynamic_rotate %118 by %c16_i32_54 dim 1 : vector<4x256xf32>, i32 -> vector<4x256xf32>
    %126 = vector.broadcast %19 : vector<1x256xf32> to vector<4x256xf32>
    %127 = arith.mulf %125, %126 : vector<4x256xf32>
    %c1_55 = arith.constant 1 : index
    %c0_56 = arith.constant 0 : index
    %c0_57 = arith.constant 0 : index
    %128 = vector.load %arg6[%c1_55, %c0_56, %c0_57] : memref<9x4x4xf32, #tpu.memory_space<vmem>>, vector<1x4x4xf32>
    %129 = vector.shape_cast %128 : vector<1x4x4xf32> to vector<4x4xf32>
    %cst_58 = arith.constant dense<0.000000e+00> : vector<4x256xf32>
    %130 = tpu.matmul %129, %127, %cst_58 {dimension_numbers = #tpu.dot_dimension_numbers<[1], [0], [0], [1], [0, 0, 1, 1], [], []>, precision = #tpu.contract_precision<fp32>} : vector<4x4xf32>, vector<4x256xf32>, vector<4x256xf32> -> vector<4x256xf32>
    %131 = arith.addf %124, %130 : vector<4x256xf32>
    %c15_i32_59 = arith.constant 15 : i32
    %132 = tpu.dynamic_rotate %118 by %c15_i32_59 dim 1 : vector<4x256xf32>, i32 -> vector<4x256xf32>
    %133 = vector.broadcast %26 : vector<1x256xf32> to vector<4x256xf32>
    %134 = arith.mulf %132, %133 : vector<4x256xf32>
    %c2_60 = arith.constant 2 : index
    %c0_61 = arith.constant 0 : index
    %c0_62 = arith.constant 0 : index
    %135 = vector.load %arg6[%c2_60, %c0_61, %c0_62] : memref<9x4x4xf32, #tpu.memory_space<vmem>>, vector<1x4x4xf32>
    %136 = vector.shape_cast %135 : vector<1x4x4xf32> to vector<4x4xf32>
    %cst_63 = arith.constant dense<0.000000e+00> : vector<4x256xf32>
    %137 = tpu.matmul %136, %134, %cst_63 {dimension_numbers = #tpu.dot_dimension_numbers<[1], [0], [0], [1], [0, 0, 1, 1], [], []>, precision = #tpu.contract_precision<fp32>} : vector<4x4xf32>, vector<4x256xf32>, vector<4x256xf32> -> vector<4x256xf32>
    %138 = arith.addf %131, %137 : vector<4x256xf32>
    %c1_i32_64 = arith.constant 1 : i32
    %139 = tpu.dynamic_rotate %118 by %c1_i32_64 dim 1 : vector<4x256xf32>, i32 -> vector<4x256xf32>
    %140 = vector.broadcast %30 : vector<1x256xf32> to vector<4x256xf32>
    %141 = arith.mulf %139, %140 : vector<4x256xf32>
    %c3_65 = arith.constant 3 : index
    %c0_66 = arith.constant 0 : index
    %c0_67 = arith.constant 0 : index
    %142 = vector.load %arg6[%c3_65, %c0_66, %c0_67] : memref<9x4x4xf32, #tpu.memory_space<vmem>>, vector<1x4x4xf32>
    %143 = vector.shape_cast %142 : vector<1x4x4xf32> to vector<4x4xf32>
    %cst_68 = arith.constant dense<0.000000e+00> : vector<4x256xf32>
    %144 = tpu.matmul %143, %141, %cst_68 {dimension_numbers = #tpu.dot_dimension_numbers<[1], [0], [0], [1], [0, 0, 1, 1], [], []>, precision = #tpu.contract_precision<fp32>} : vector<4x4xf32>, vector<4x256xf32>, vector<4x256xf32> -> vector<4x256xf32>
    %145 = arith.addf %138, %144 : vector<4x256xf32>
    %c4_69 = arith.constant 4 : index
    %c0_70 = arith.constant 0 : index
    %c0_71 = arith.constant 0 : index
    %146 = vector.load %arg6[%c4_69, %c0_70, %c0_71] : memref<9x4x4xf32, #tpu.memory_space<vmem>>, vector<1x4x4xf32>
    %147 = vector.shape_cast %146 : vector<1x4x4xf32> to vector<4x4xf32>
    %cst_72 = arith.constant dense<0.000000e+00> : vector<4x256xf32>
    %148 = tpu.matmul %147, %118, %cst_72 {dimension_numbers = #tpu.dot_dimension_numbers<[1], [0], [0], [1], [0, 0, 1, 1], [], []>, precision = #tpu.contract_precision<fp32>} : vector<4x4xf32>, vector<4x256xf32>, vector<4x256xf32> -> vector<4x256xf32>
    %149 = arith.addf %145, %148 : vector<4x256xf32>
    %c255_i32_73 = arith.constant 255 : i32
    %150 = tpu.dynamic_rotate %118 by %c255_i32_73 dim 1 : vector<4x256xf32>, i32 -> vector<4x256xf32>
    %151 = vector.broadcast %34 : vector<1x256xf32> to vector<4x256xf32>
    %152 = arith.mulf %150, %151 : vector<4x256xf32>
    %c5_74 = arith.constant 5 : index
    %c0_75 = arith.constant 0 : index
    %c0_76 = arith.constant 0 : index
    %153 = vector.load %arg6[%c5_74, %c0_75, %c0_76] : memref<9x4x4xf32, #tpu.memory_space<vmem>>, vector<1x4x4xf32>
    %154 = vector.shape_cast %153 : vector<1x4x4xf32> to vector<4x4xf32>
    %cst_77 = arith.constant dense<0.000000e+00> : vector<4x256xf32>
    %155 = tpu.matmul %154, %152, %cst_77 {dimension_numbers = #tpu.dot_dimension_numbers<[1], [0], [0], [1], [0, 0, 1, 1], [], []>, precision = #tpu.contract_precision<fp32>} : vector<4x4xf32>, vector<4x256xf32>, vector<4x256xf32> -> vector<4x256xf32>
    %156 = arith.addf %149, %155 : vector<4x256xf32>
    %c241_i32_78 = arith.constant 241 : i32
    %157 = tpu.dynamic_rotate %118 by %c241_i32_78 dim 1 : vector<4x256xf32>, i32 -> vector<4x256xf32>
    %158 = vector.broadcast %41 : vector<1x256xf32> to vector<4x256xf32>
    %159 = arith.mulf %157, %158 : vector<4x256xf32>
    %c6_79 = arith.constant 6 : index
    %c0_80 = arith.constant 0 : index
    %c0_81 = arith.constant 0 : index
    %160 = vector.load %arg6[%c6_79, %c0_80, %c0_81] : memref<9x4x4xf32, #tpu.memory_space<vmem>>, vector<1x4x4xf32>
    %161 = vector.shape_cast %160 : vector<1x4x4xf32> to vector<4x4xf32>
    %cst_82 = arith.constant dense<0.000000e+00> : vector<4x256xf32>
    %162 = tpu.matmul %161, %159, %cst_82 {dimension_numbers = #tpu.dot_dimension_numbers<[1], [0], [0], [1], [0, 0, 1, 1], [], []>, precision = #tpu.contract_precision<fp32>} : vector<4x4xf32>, vector<4x256xf32>, vector<4x256xf32> -> vector<4x256xf32>
    %163 = arith.addf %156, %162 : vector<4x256xf32>
    %c240_i32_83 = arith.constant 240 : i32
    %164 = tpu.dynamic_rotate %118 by %c240_i32_83 dim 1 : vector<4x256xf32>, i32 -> vector<4x256xf32>
    %165 = vector.broadcast %45 : vector<1x256xf32> to vector<4x256xf32>
    %166 = arith.mulf %164, %165 : vector<4x256xf32>
    %c7_84 = arith.constant 7 : index
    %c0_85 = arith.constant 0 : index
    %c0_86 = arith.constant 0 : index
    %167 = vector.load %arg6[%c7_84, %c0_85, %c0_86] : memref<9x4x4xf32, #tpu.memory_space<vmem>>, vector<1x4x4xf32>
    %168 = vector.shape_cast %167 : vector<1x4x4xf32> to vector<4x4xf32>
    %cst_87 = arith.constant dense<0.000000e+00> : vector<4x256xf32>
    %169 = tpu.matmul %168, %166, %cst_87 {dimension_numbers = #tpu.dot_dimension_numbers<[1], [0], [0], [1], [0, 0, 1, 1], [], []>, precision = #tpu.contract_precision<fp32>} : vector<4x4xf32>, vector<4x256xf32>, vector<4x256xf32> -> vector<4x256xf32>
    %170 = arith.addf %163, %169 : vector<4x256xf32>
    %c239_i32_88 = arith.constant 239 : i32
    %171 = tpu.dynamic_rotate %118 by %c239_i32_88 dim 1 : vector<4x256xf32>, i32 -> vector<4x256xf32>
    %172 = vector.broadcast %52 : vector<1x256xf32> to vector<4x256xf32>
    %173 = arith.mulf %171, %172 : vector<4x256xf32>
    %c8_89 = arith.constant 8 : index
    %c0_90 = arith.constant 0 : index
    %c0_91 = arith.constant 0 : index
    %174 = vector.load %arg6[%c8_89, %c0_90, %c0_91] : memref<9x4x4xf32, #tpu.memory_space<vmem>>, vector<1x4x4xf32>
    %175 = vector.shape_cast %174 : vector<1x4x4xf32> to vector<4x4xf32>
    %cst_92 = arith.constant dense<0.000000e+00> : vector<4x256xf32>
    %176 = tpu.matmul %175, %173, %cst_92 {dimension_numbers = #tpu.dot_dimension_numbers<[1], [0], [0], [1], [0, 0, 1, 1], [], []>, precision = #tpu.contract_precision<fp32>} : vector<4x4xf32>, vector<4x256xf32>, vector<4x256xf32> -> vector<4x256xf32>
    %177 = arith.addf %170, %176 : vector<4x256xf32>
    %178 = arith.addf %55, %177 : vector<4x256xf32>
    %cst_93 = arith.constant 0.000000e+00 : f32
    %179 = vector.broadcast %cst_93 : f32 to vector<4x256xf32>
    %180 = arith.maximumf %178, %179 : vector<4x256xf32>
    %c0_94 = arith.constant 0 : index
    %c0_95 = arith.constant 0 : index
    %181 = vector.load %arg7[%c0_94, %c0_95] : memref<4x256xf32, #tpu.memory_space<vmem>>, vector<4x256xf32>
    tpu.vector_store %arg7[%c0_94, %c0_95], %180 {strides = array<i32>} : memref<4x256xf32, #tpu.memory_space<vmem>>, vector<4x256xf32>,
    return
  }
  func.func @transform_0(%arg0: i32) -> (i32, i32) {
    %c0_i32 = arith.constant 0 : i32
    %c0_i32_0 = arith.constant 0 : i32
    return %c0_i32, %arg0 : i32, i32
  }
  func.func @transform_1(%arg0: i32) -> (i32, i32) {
    %c0_i32 = arith.constant 0 : i32
    %c0_i32_0 = arith.constant 0 : i32
    %c0_i32_1 = arith.constant 0 : i32
    return %c0_i32, %c0_i32_0 : i32, i32
  }
  func.func @transform_2(%arg0: i32) -> (i32, i32) {
    %c0_i32 = arith.constant 0 : i32
    %c0_i32_0 = arith.constant 0 : i32
    %c0_i32_1 = arith.constant 0 : i32
    return %c0_i32, %c0_i32_0 : i32, i32
  }
  func.func @transform_3(%arg0: i32) -> (i32, i32, i32) {
    %c0_i32 = arith.constant 0 : i32
    %c0_i32_0 = arith.constant 0 : i32
    %c0_i32_1 = arith.constant 0 : i32
    %c0_i32_2 = arith.constant 0 : i32
    return %c0_i32, %c0_i32_0, %c0_i32_1 : i32, i32, i32
  }
  func.func @transform_4(%arg0: i32) -> (i32, i32) {
    %c0_i32 = arith.constant 0 : i32
    %c0_i32_0 = arith.constant 0 : i32
    %c0_i32_1 = arith.constant 0 : i32
    return %c0_i32, %c0_i32_0 : i32, i32
  }
  func.func @transform_5(%arg0: i32) -> (i32, i32, i32) {
    %c0_i32 = arith.constant 0 : i32
    %c0_i32_0 = arith.constant 0 : i32
    %c0_i32_1 = arith.constant 0 : i32
    %c0_i32_2 = arith.constant 0 : i32
    return %c0_i32, %c0_i32_0, %c0_i32_1 : i32, i32, i32
  }
  func.func @transform_6(%arg0: i32) -> (i32, i32) {
    %c0_i32 = arith.constant 0 : i32
    %c0_i32_0 = arith.constant 0 : i32
    return %c0_i32, %arg0 : i32, i32
  }
}

</mosaic_0001>

<bundles_post_ra>
// kernel: rrb_forward.1
= control target key start
LH: loop header
LB: loop body
LE: loop exit
PB: predicated region body
PF: predicated region fallthrough
CT: control target
= control target key end

     0   :  { %s9714_s21 = smov 0   ;;  %s10882_s0 = inlined_call_operand.vmem [shape: f32[4,512], index: 0, kind: input, shape index: {}]   ;;  %s10883_s1 = inlined_call_operand.vmem [shape: f32[4,4], index: 1, kind: input, shape index: {}]   ;;  %s10884_s2 = inlined_call_operand.vmem [shape: f32[4,1], index: 2, kind: input, shape index: {}]   ;;  %s10885_s3 = inlined_call_operand.vmem [shape: f32[9,4,4], index: 3, kind: input, shape index: {}]   ;;  %s10886_s4 = inlined_call_operand.vmem [shape: f32[4,1], index: 4, kind: input, shape index: {}]   ;;  %s10887_s5 = inlined_call_operand.vmem [shape: f32[9,4,4], index: 5, kind: input, shape index: {}]   ;;  %s10888_s6 = inlined_call_operand.vmem [shape: f32[4,512], index: 6, kind: output, shape index: {}]  }
   0x1 LB: > { %s9599_s22 = sadd.s32 4294967295, %s9667_s21   ;;  %p9603_p0 = scmp.ge.s32.totalorder %s9667_s21, 1  ;;  %s9667_s21 = sphi %s9714_s21, %s16_s21  }
   0x2   : > { %p213_p1 = scmp.lt.s32.totalorder %s9667_s21, 3 }
   0x4   : > { %p214_p2 = pnand %p9603_p0, %p213_p1 }
   0x6   : > { %217 = sbr.rel (%p214_p2) target bundleno = 1117 (0x45d), region = 44 }
   0xb   : > { %s9604_s23 = sshll.u32 %s9599_s22, 1  ;;  %v256_v0 = vld [vmem:[%s10883_s1] sm:$0xf]  ;;  %vm321_vm0 = vcmask 31744   ;;  %v10889_v1 = vmov 0.0   ;;  %v9670_v5 = vmov 0   ;;  %v259_v49 = vlaneseq }
   0xc   : > { %p244_p3 = scmp.lt.s32.totalorder %s9604_s23, 3  ;;  %396 = vmatprep.mubr.f32.mxu0 %v10889_v1  ;;  %v323_v2 = vsel %vm321_vm0, %v256_v0, 0  ;;  %482 = vmatprep.mubr.f32.mxu1 %v10889_v1  ;;  %v257_v3 = vld [vmem:[%s10884_s2] sm:$0xf]  ;;  %vm325_vm1 = vcmask 1043456   ;;  %s9671_s8 = smov 16  }
   0xd   : > { %v397_v4 = vand.u32 4294901760, %v323_v2  ;;  %9658 = vset.pattern.permute.xlu0 %v9670_v5  ;;  %9659 = vset.pattern.permute.xlu1 %v9670_v5  ;;  %s9672_s9 = smov 17   ;;  %s9673_s10 = smov 15   ;;  %v9622_v50 = vld [vmem:[%s10885_s3 + $0x4] sm:$0xf]  ;;  %v9786_v51 = vand.u32 127, %v259_v49 }
   0xe   : > { %s10975_s23 = smov (!%p244_p3, %s9604_s23), 3  ;;  %316 = vperm.xlu0 %9658, %v257_v3   ;;  %s9674_s11 = smov 1   ;;  %v817_v52 = vsel %vm321_vm0, %v9622_v50, 0  ;;  %v258_v59 = vld [vmem:[%s10886_s4] sm:$0xf] }
   0xf   : > { %v398_v6 = vsub.f32 %v323_v2, %v397_v4  ;;  %s9605_s28 = sshll.u32 %s10975_s23, 2  ;;  %s9675_s12 = smov 127   ;;  %10911 = vst [vmem:[#allocation4_spill] sm:$0xff] %v9786_v51  ;;  %v9790_v53 = vadd.s32 128, %v9786_v51  ;;  %v9792_v54 = vand.u32 4294901760, %v817_v52  ;;  %v262_v55 = vand.u32 255, %v9786_v51 }
  0x10   : > { %s247_s7 = scalar_lea.vmem %s10882_s0, %s9605_s28  ;;  %s9676_s13 = smov 113   ;;  %v804_v60 = vld [vmem:[%s10885_s3] sm:$0xf]  ;;  %vm809_vm4 = vcmp.lt.s32.totalorder %v9786_v51, 16  ;;  %vm799_vm7 = vcmp.lt.s32.totalorder %v9786_v51, 17  ;;  %vm1768_vm11 = vcmp.lt.s32.totalorder %v9786_v51, 15 }
  0x11   : > { %v399_v7 = vand.u32 4294901760, %v398_v6  ;;  %v255_v8 = vld [vmem:[%s247_s7] sm:$0xff]  ;;  %s9677_s14 = smov 112   ;;  %s9678_s15 = smov 111   ;;  %v263_v56 = vand.u32 255, %v9790_v53  ;;  %v9797_v57 = vsub.f32 %v817_v52, %v9792_v54  ;;  %v9799_v58 = vand.u32 15, %v262_v55 }
  0x12   : > { %v320_v9 = vcombine.high %v255_v8, %v255_v8  ;;  %v326_v10 = vsel %vm325_vm1, %v255_v8, 0  ;;  %vm9807_vm2 = vcmp.ge.s32.totalorder %v262_v55, 16  ;;  %v1291_v0 = vsel %vm321_vm0, %v804_v60, 0  ;;  %s253_s24 = scalar_lea.vmem %s10888_s6, %s9605_s28 }
  0x13   : > { %v400_v11 = vsub.f32 %v398_v6, %v399_v7  ;;  %v362_v12 = vand.u32 4294901760, %v326_v10  ;;  %v9813_v62 = vand.u32 15, %v263_v56  ;;  %v894_v63 = vand.u32 4294901760, %v9797_v57 }
  0x14   : > { %v328_v13 = vsel %vm325_vm1, %v320_v9, 0  ;;  %vm268_vm3 = vcmp.ge.s32.totalorder %v9799_v58, 1  ;;  %v9822_v3 = vsel %vm9807_vm2, 1.0, %v10889_v1  ;;  %vm280_vm8 = vcmp.le.s32.totalorder %v9799_v58, 14 }
  0x15   : > { %v360_v14 = vand.u32 4294901760, %v328_v13  ;;  %v401_v15 = vand.u32 4294901760, %v400_v11  ;;  %v445_v16 = vsub.f32 %v326_v10, %v362_v12  ;;  %10914 = vst [vmem:[#allocation5_spill] sm:$0xff] %v9822_v3  ;;  %vm269_vm5 = vcmp.ge.s32.totalorder %v9813_v62, 1  ;;  %vm270_vm6 = vmand %vm9807_vm2, %vm268_vm3 }
  0x16   : > { %v895_v5 = vsub.f32 %v9797_v57, %v894_v63  ;;  %vm281_vm9 = vcmp.le.s32.totalorder %v9813_v62, 14  ;;  %vm282_vm10 = vmand %vm9807_vm2, %vm280_vm8  ;;  %vm2255_vm12 = vcmp.lt.s32.totalorder %v9786_v51, 1  ;;  %vm3220_vm13 = vcmp.lt.s32.totalorder %v9786_v51, 127 }
  0x17   : > { %361 = vmatprep.subr.mxu0 %v360_v14  ;;  %v439_v17 = vsub.f32 %v328_v13, %v360_v14  ;;  %v446_v18 = vand.u32 4294901760, %v445_v16  ;;  %v9845_v13 = vsel %vm270_vm6, 1.0, %v10889_v1  ;;  %vm10052_vm14 = vcmp.lt.s32.totalorder %v263_v56, 240 }
  0x18   : > { %363 = vmatpush1.msra.mxu0 %v362_v12  ;;  %10915 = vst [vmem:[#allocation6_spill] sm:$0xff] %v9845_v13  ;;  %vm10068_vm15 = vmand %vm10052_vm14, %vm269_vm5  ;;  %vm3707_vm2 = vcmp.lt.s32.totalorder %v9786_v51, 113  ;;  %vm4681_vm6 = vcmp.lt.s32.totalorder %v9786_v51, 111 }
  0x19   : > { %402 = vmatmul.mubr.f32.vlgmr.msra.gmra.mxu0 %v401_v15  ;;  %v440_v19 = vand.u32 4294901760, %v439_v17  ;;  %522 = vmatprep.subr.mxu0 %v439_v17  ;;  %v447_v20 = vsub.f32 %v445_v16, %v446_v18 }
  0x1a   : > { %525 = vmatpush1.msra.mxu0 %v445_v16  ;;  %558 = vmatprep.mubr.f32.mxu0 %v10889_v1 }
  0x1b   : > { %v441_v21 = vsub.f32 %v439_v17, %v440_v19  ;;  %676 = vmatprep.subr.mxu0 %v440_v19  ;;  %v448_v22 = vand.u32 4294901760, %v447_v20  ;;  %v896_v17 = vand.u32 4294901760, %v895_v5 }
  0x1d   : > { %v442_v23 = vand.u32 4294901760, %v441_v21  ;;  %561 = vmatmul.mubr.f32.vlgmr.msra.gmra.mxu0 %v398_v6  ;;  %v9832_v6 = vand.u32 4294901760, %v1291_v0 }
  0x1e   : > { %680 = vmatpush1.msra.mxu0 %v446_v18  ;;  %713 = vmatprep.mubr.f32.mxu0 %v10889_v1 }
  0x1f   : > { %443 = vmatprep.subr.mxu1 %v442_v23  ;;  %v9855_v18 = vsub.f32 %v1291_v0, %v9832_v6 }
  0x20   : > { %449 = vmatpush1.msra.mxu1 %v448_v22 }
  0x21   : > { %484 = vmatmul.mubr.f32.vlgmr.msra.gmra.mxu1 %v397_v4  ;;  %598 = vmatprep.subr.mxu1 %v360_v14 }
  0x22   : > { %600 = vmatpush1.msra.mxu1 %v362_v12  ;;  %633 = vmatprep.mubr.f32.mxu1 %v10889_v1 }
  0x23   : > { %715 = vmatmul.mubr.f32.vlgmr.msra.gmra.mxu0 %v397_v4  ;;  %752 = vmatprep.subr.mxu1 %v360_v14  ;;  %v9850_v14 = vsel %vm269_vm5, 1.0, %v10889_v1  ;;  %vm10179_vm5 = vmand %vm10052_vm14, %vm281_vm9 }
  0x24   : > { %891 = vmatprep.mubr.f32.mxu0 %v10889_v1  ;;  %10916 = vst [vmem:[#allocation7_spill] sm:$0xff] %v9850_v14 }
  0x25   : > { %637 = vmatmul.mubr.f32.vlgmr.msra.gmra.mxu1 %v399_v7 }
  0x26   : > { %754 = vmatpush1.msra.mxu1 %v362_v12  ;;  %787 = vmatprep.mubr.f32.mxu1 %v10889_v1 }
  0x29   : > { %789 = vmatmul.mubr.f32.vlgmr.msra.gmra.mxu1 %v397_v4 }
  0x2a   : > { %977 = vmatprep.mubr.f32.mxu1 %v10889_v1 }
  0x89   : > { %v317_v25 = vpop.permute.xlu0 %316 }
  0xd9   : > { %v403_v24 = vpop.f32.mrf.mxu0 }
  0xda   : > { %v404_v28 = vadd.f32 %v403_v24, %v317_v25 }
  0xdb   : > { %v405_v26 = vpop.f32.mrf.mxu0 }
  0xdc   : > { %v406_v31 = vadd.f32 %v405_v26, %v317_v25  ;;  %v9623_v25 = vld [vmem:[%s10885_s3 + $0x8] sm:$0xf] }
  0xdd   : > { %v562_v27 = vpop.f32.mrf.mxu0 }
  0xdf   : > { %v564_v30 = vpop.f32.mrf.mxu0 }
  0xe1   : > { %v485_v29 = vpop.f32.mrf.mxu1 }
  0xe2   : > { %v486_v32 = vadd.f32 %v485_v29, %v404_v28 }
  0xe3   : > { %v487_v33 = vpop.f32.mrf.mxu1  ;;  %v716_v37 = vpop.f32.mrf.mxu0 }
  0xe4   : > { %v563_v34 = vadd.f32 %v562_v27, %v486_v32  ;;  %v488_v35 = vadd.f32 %v487_v33, %v406_v31  ;;  %v9880_v27 = vsel %vm281_vm9, 1.0, %v10889_v1  ;;  %v9885_v32 = vsel %vm282_vm10, 1.0, %v10889_v1 }
  0xe5   : > { %v638_v36 = vpop.f32.mrf.mxu1  ;;  %v718_v43 = vpop.f32.mrf.mxu0  ;;  %10917 = vst [vmem:[#allocation8_spill] sm:$0xff] %v9880_v27  ;;  %10918 = vst [vmem:[#allocation9_spill] sm:$0xff] %v9885_v32 }
  0xe6   : > { %v565_v38 = vadd.f32 %v564_v30, %v488_v35  ;;  %v639_v39 = vadd.f32 %v638_v36, %v563_v34  ;;  %v1368_v34 = vand.u32 4294901760, %v9855_v18 }
  0xe7   : > { %v640_v40 = vpop.f32.mrf.mxu1 }
  0xe8   : > { %v717_v41 = vadd.f32 %v716_v37, %v639_v39  ;;  %v641_v42 = vadd.f32 %v640_v40, %v565_v38  ;;  %v1776_v38 = vsel %vm321_vm0, %v9623_v25, 0  ;;  %v1369_v52 = vsub.f32 %v9855_v18, %v1368_v34 }
  0xe9   : > { %v790_v44 = vpop.f32.mrf.mxu1  ;;  %v9902_v49 = vand.u32 4294901760, %v1776_v38 }
  0xea   : > { %v719_v45 = vadd.f32 %v718_v43, %v641_v42  ;;  %v9747_v46 = vadd.f32 %v790_v44, %v717_v41 }
  0xeb   : > { %v792_v47 = vpop.f32.mrf.mxu1 }
  0xec   : > { %10909 = vst [vmem:[#allocation2_spill] sm:$0xff] %v9747_v46  ;;  %v9749_v48 = vadd.f32 %v792_v47, %v719_v45  ;;  %805 = vrot.lane.b32.xlu0 %v9747_v46, %s9671_s8 }
  0xee   : > { %10910 = vst [vmem:[#allocation3_spill] sm:$0xff] %v9749_v48  ;;  %807 = vrot.lane.b32.xlu1 %v9749_v48, %s9671_s8 }
  0xf0   : > { %797 = vrot.lane.b32.xlu0 %v9749_v48, %s9672_s9 }
  0xf2   : > { %795 = vrot.lane.b32.xlu1 %v9747_v46, %s9672_s9 }
  0xf4   : > { %1766 = vrot.lane.b32.xlu0 %v9749_v48, %s9673_s10 }
  0xf6   : > { %1764 = vrot.lane.b32.xlu1 %v9747_v46, %s9673_s10 }
  0xf8   : > { %2253 = vrot.lane.b32.xlu0 %v9749_v48, %s9674_s11 }
  0xfa   : > { %2251 = vrot.lane.b32.xlu1 %v9747_v46, %s9674_s11 }
  0xfc   : > { %3218 = vrot.lane.b32.xlu0 %v9749_v48, %s9675_s12 }
  0xfe   : > { %3216 = vrot.lane.b32.xlu1 %v9747_v46, %s9675_s12 }
 0x100   : > { %3705 = vrot.lane.b32.xlu0 %v9749_v48, %s9676_s13 }
 0x102   : > { %3703 = vrot.lane.b32.xlu1 %v9747_v46, %s9676_s13 }
 0x104   : > { %4192 = vrot.lane.b32.xlu0 %v9749_v48, %s9677_s14 }
 0x106   : > { %4190 = vrot.lane.b32.xlu1 %v9747_v46, %s9677_s14 }
 0x108   : > { %4679 = vrot.lane.b32.xlu0 %v9749_v48, %s9678_s15 }
 0x10a   : > { %4677 = vrot.lane.b32.xlu1 %v9747_v46, %s9678_s15 }
 0x10e   : > { %5166 = vperm.xlu1 %9659, %v258_v59  }
 0x15e   : > { %v806_v2 = vpop.permute.xlu0 %805 }
 0x160   : > { %v808_v4 = vpop.permute.xlu1 %807 }
 0x161   : > { %v810_v7 = vsel %vm809_vm4, %v806_v2, %v808_v4  ;;  %v811_v8 = vsel %vm809_vm4, %v808_v4, %v806_v2  ;;  %v9914_v2 = vsub.f32 %v1776_v38, %v9902_v49 }
 0x162   : > { %v812_v9 = vmul.f32 %v9822_v3, %v811_v8  ;;  %v823_v10 = vsel %vm325_vm1, %v810_v7, 0  ;;  %v798_v11 = vpop.permute.xlu0 %797  ;;  %v1370_v7 = vand.u32 4294901760, %v1369_v52 }
 0x163   : > { %v9842_v12 = vand.u32 4294901760, %v823_v10 }
 0x164   : > { %v820_v15 = vsel %vm325_vm1, %v812_v9, 0  ;;  %v796_v16 = vpop.permute.xlu1 %795 }
 0x165   : > { %v9857_v19 = vand.u32 4294901760, %v820_v15  ;;  %v934_v20 = vsub.f32 %v823_v10, %v9842_v12  ;;  %v800_v21 = vsel %vm799_vm7, %v796_v16, %v798_v11  ;;  %v801_v22 = vsel %vm799_vm7, %v798_v11, %v796_v16  ;;  %856 = vmatprep.subr.mxu0 %v9842_v12  ;;  %v9624_v11 = vld [vmem:[%s10885_s3 + $0xc] sm:$0xf] }
 0x166   : > { %v802_v23 = vmul.f32 %v9845_v13, %v801_v22  ;;  %v803_v24 = vmul.f32 %v9850_v14, %v800_v21  ;;  %v1767_v31 = vpop.permute.xlu0 %1766  ;;  %v9940_v21 = vsel %vm268_vm3, 1.0, %v10889_v1  ;;  %vm4194_vm3 = vcmp.lt.s32.totalorder %v9786_v51, 112 }
 0x167   : > { %v940_v26 = vsub.f32 %v820_v15, %v9857_v19  ;;  %858 = vmatpush1.msra.mxu0 %v9857_v19  ;;  %v935_v28 = vand.u32 4294901760, %v934_v20  ;;  %10919 = vst [vmem:[#allocation10_spill] sm:$0xff] %v9940_v21 }
 0x168   : > { %v1294_v29 = vsel %vm325_vm1, %v802_v23, 0  ;;  %v1297_v30 = vsel %vm325_vm1, %v803_v24, 0  ;;  %v1765_v33 = vpop.permute.xlu1 %1764  ;;  %897 = vmatmul.mubr.f32.vlgmr.msra.gmra.mxu0 %v896_v17  ;;  %1017 = vmatprep.subr.mxu0 %v934_v20  ;;  %v1853_v17 = vand.u32 4294901760, %v9914_v2 }
 0x169   : > { %v9888_v35 = vand.u32 4294901760, %v1297_v30  ;;  %v9890_v36 = vand.u32 4294901760, %v1294_v29  ;;  %v1769_v37 = vsel %vm1768_vm11, %v1765_v33, %v1767_v31  ;;  %1020 = vmatpush1.msra.mxu0 %v940_v26  ;;  %1053 = vmatprep.mubr.f32.mxu0 %v10889_v1  ;;  %v1770_v39 = vsel %vm1768_vm11, %v1767_v31, %v1765_v33 }
 0x16a   : > { %v1772_v40 = vmul.f32 %v9880_v27, %v1769_v37  ;;  %1171 = vmatprep.subr.mxu0 %v935_v28  ;;  %v941_v41 = vand.u32 4294901760, %v940_v26  ;;  %v936_v42 = vsub.f32 %v934_v20, %v935_v28  ;;  %v1771_v50 = vmul.f32 %v9885_v32, %v1770_v39  ;;  %v2254_v9 = vpop.permute.xlu0 %2253  ;;  %v9625_v39 = vld [vmem:[%s10885_s3 + $0x10] sm:$0xf] }
 0x16b   : > { %v1408_v43 = vsub.f32 %v1297_v30, %v9888_v35  ;;  %v1414_v44 = vsub.f32 %v1294_v29, %v9890_v36  ;;  %v1854_v25 = vsub.f32 %v9914_v2, %v1853_v17 }
 0x16c   : > { %1056 = vmatmul.mubr.f32.vlgmr.msra.gmra.mxu0 %v9797_v57  ;;  %v937_v45 = vand.u32 4294901760, %v936_v42  ;;  %v942_v47 = vsub.f32 %v940_v26, %v941_v41  ;;  %v1782_v55 = vsel %vm325_vm1, %v1772_v40, 0  ;;  %v2252_v61 = vpop.permute.xlu1 %2251  ;;  %v1779_v4 = vsel %vm325_vm1, %v1771_v50, 0 }
 0x16d   : > { %1175 = vmatpush1.msra.mxu0 %v941_v41  ;;  %1208 = vmatprep.mubr.f32.mxu0 %v10889_v1  ;;  %v1409_v60 = vand.u32 4294901760, %v1408_v43  ;;  %v1415_v0 = vand.u32 4294901760, %v1414_v44  ;;  %v9917_v5 = vand.u32 4294901760, %v1782_v55  ;;  %v2256_v10 = vsel %vm2255_vm12, %v2252_v61, %v2254_v9 }
 0x16e   : > { %938 = vmatprep.subr.mxu1 %v937_v45  ;;  %1330 = vmatprep.subr.mxu0 %v9888_v35  ;;  %v943_v59 = vand.u32 4294901760, %v942_v47  ;;  %v9929_v15 = vand.u32 4294901760, %v1779_v4  ;;  %v2257_v22 = vsel %vm2255_vm12, %v2254_v9, %v2252_v61  ;;  %v2259_v23 = vmul.f32 %v9850_v14, %v2256_v10 }
 0x16f   : > { %v1410_v8 = vsub.f32 %v1408_v43, %v1409_v60  ;;  %v1416_v16 = vsub.f32 %v1414_v44, %v1415_v0  ;;  %v2263_v57 = vsel %vm321_vm0, %v9624_v11, 0  ;;  %v2258_v26 = vmul.f32 %v9940_v21, %v2257_v22 }
 0x170   : > { %944 = vmatpush1.msra.mxu1 %v943_v59  ;;  %1210 = vmatmul.mubr.f32.vlgmr.msra.gmra.mxu0 %v9792_v54  ;;  %v9956_v28 = vand.u32 4294901760, %v2263_v57  ;;  %v2269_v29 = vsel %vm325_vm1, %v2259_v23, 0  ;;  %v1855_v30 = vand.u32 4294901760, %v1854_v25  ;;  %v2747_v50 = vsel %vm325_vm1, %v9749_v48, 0 }
 0x171   : > { %979 = vmatmul.mubr.f32.vlgmr.msra.gmra.mxu1 %v9792_v54  ;;  %1093 = vmatprep.subr.mxu1 %v9842_v12  ;;  %v1411_v20 = vand.u32 4294901760, %v1410_v8  ;;  %v1417_v24 = vand.u32 4294901760, %v1416_v16  ;;  %v9964_v33 = vand.u32 4294901760, %v2269_v29  ;;  %v10011_v61 = vand.u32 4294901760, %v2747_v50 }
 0x172   : > { %1332 = vmatpush1.msra.mxu0 %v9890_v36  ;;  %1095 = vmatpush1.msra.mxu1 %v9857_v19  ;;  %v9969_v38 = vsub.f32 %v2263_v57, %v9956_v28 }
 0x173   : > { %1491 = vmatprep.subr.mxu0 %v1408_v43  ;;  %1247 = vmatprep.subr.mxu1 %v9842_v12  ;;  %v1893_v12 = vsub.f32 %v1782_v55, %v9917_v5  ;;  %v2380_v43 = vsub.f32 %v2269_v29, %v9964_v33  ;;  %v2744_v55 = vsel %vm325_vm1, %v9747_v46, 0  ;;  %v2858_v16 = vsub.f32 %v2747_v50, %v10011_v61 }
 0x174   : > { %1128 = vmatprep.mubr.f32.mxu1 %v10889_v1  ;;  %1365 = vmatprep.mubr.f32.mxu0 %v10889_v1  ;;  %v10027_v10 = vand.u32 4294901760, %v2744_v55 }
 0x175   : > { %1132 = vmatmul.mubr.f32.vlgmr.msra.gmra.mxu1 %v894_v63  ;;  %1371 = vmatmul.mubr.f32.vlgmr.msra.gmra.mxu0 %v1370_v7  ;;  %v1899_v63 = vsub.f32 %v1779_v4, %v9929_v15  ;;  %v3219_v4 = vpop.permute.xlu0 %3218  ;;  %v9626_v7 = vld [vmem:[%s10885_s3 + $0x14] sm:$0xf] }
 0x176   : > { %1249 = vmatpush1.msra.mxu1 %v9857_v19  ;;  %1494 = vmatpush1.msra.mxu0 %v1414_v44  ;;  %v1894_v19 = vand.u32 4294901760, %v1893_v12  ;;  %v2741_v44 = vsel %vm321_vm0, %v9625_v39, 0  ;;  %v2864_v58 = vsub.f32 %v2744_v55, %v10027_v10 }
 0x177   : > { %1412 = vmatprep.subr.mxu1 %v1411_v20  ;;  %1645 = vmatprep.subr.mxu0 %v1409_v60  ;;  %v1900_v31 = vand.u32 4294901760, %v1899_v63  ;;  %v9997_v47 = vand.u32 4294901760, %v2741_v44 }
 0x178   : > { %1282 = vmatprep.mubr.f32.mxu1 %v10889_v1  ;;  %1527 = vmatprep.mubr.f32.mxu0 %v10889_v1  ;;  %v1895_v37 = vsub.f32 %v1893_v12, %v1894_v19 }
 0x179   : > { %1284 = vmatmul.mubr.f32.vlgmr.msra.gmra.mxu1 %v9792_v54  ;;  %1530 = vmatmul.mubr.f32.vlgmr.msra.gmra.mxu0 %v9855_v18  ;;  %v2266_v54 = vsel %vm325_vm1, %v2258_v26, 0  ;;  %v1901_v41 = vsub.f32 %v1899_v63, %v1900_v31 }
 0x17a   : > { %1418 = vmatpush1.msra.mxu1 %v1417_v24  ;;  %1649 = vmatpush1.msra.mxu0 %v1415_v0  ;;  %v9977_v40 = vand.u32 4294901760, %v2266_v54  ;;  %v1896_v42 = vand.u32 4294901760, %v1895_v37  ;;  %v10014_v0 = vsub.f32 %v2741_v44, %v9997_v47  ;;  %v2859_v24 = vand.u32 4294901760, %v2858_v16 }
 0x17b   : > { %1567 = vmatprep.subr.mxu1 %v9888_v35  ;;  %1815 = vmatprep.subr.mxu0 %v9917_v5  ;;  %v1902_v18 = vand.u32 4294901760, %v1901_v41  ;;  %v10088_v37 = vsel %vm10068_vm15, 1.0, %v10889_v1  ;;  %v9627_v41 = vld [vmem:[%s10885_s3 + $0x18] sm:$0xf] }
 0x17c   : > { %1451 = vmatprep.mubr.f32.mxu1 %v10889_v1  ;;  %1682 = vmatprep.mubr.f32.mxu0 %v10889_v1  ;;  %v9988_v45 = vsub.f32 %v2266_v54, %v9977_v40  ;;  %v2818_v20 = vand.u32 4294901760, %v10014_v0  ;;  %v3706_v54 = vpop.permute.xlu0 %3705  ;;  %10925 = vst [vmem:[#allocation12_spill] sm:$0xff] %v10088_v37 }
 0x17d   : > { %1453 = vmatmul.mubr.f32.vlgmr.msra.gmra.mxu1 %v9832_v6  ;;  %1684 = vmatmul.mubr.f32.vlgmr.msra.gmra.mxu0 %v9832_v6 }
 0x17e   : > { %1569 = vmatpush1.msra.mxu1 %v9890_v36  ;;  %1817 = vmatpush1.msra.mxu0 %v9929_v15  ;;  %v2387_v52 = vand.u32 4294901760, %v9988_v45 }
 0x17f   : > { %1721 = vmatprep.subr.mxu1 %v9888_v35  ;;  %1976 = vmatprep.subr.mxu0 %v1893_v12  ;;  %v2340_v35 = vand.u32 4294901760, %v9969_v38  ;;  %v10037_v12 = vsel %vm280_vm8, 1.0, %v10889_v1 }
 0x180   : > { %1602 = vmatprep.mubr.f32.mxu1 %v10889_v1  ;;  %1850 = vmatprep.mubr.f32.mxu0 %v10889_v1  ;;  %v2388_v9 = vsub.f32 %v9988_v45, %v2387_v52  ;;  %10920 = vst [vmem:[#allocation11_spill] sm:$0xff] %v10037_v12 }
 0x181   : > { %1606 = vmatmul.mubr.f32.vlgmr.msra.gmra.mxu1 %v1368_v34  ;;  %1856 = vmatmul.mubr.f32.vlgmr.msra.gmra.mxu0 %v1855_v30  ;;  %v2341_v34 = vsub.f32 %v9969_v38, %v2340_v35 }
 0x182   : > { %1723 = vmatpush1.msra.mxu1 %v9890_v36  ;;  %1979 = vmatpush1.msra.mxu0 %v1899_v63  ;;  %v2381_v36 = vand.u32 4294901760, %v2380_v43 }
 0x183   : > { %1897 = vmatprep.subr.mxu1 %v1896_v42  ;;  %2130 = vmatprep.subr.mxu0 %v1894_v19  ;;  %v2342_v59 = vand.u32 4294901760, %v2341_v34 }
 0x184   : > { %1756 = vmatprep.mubr.f32.mxu1 %v10889_v1  ;;  %2012 = vmatprep.mubr.f32.mxu0 %v10889_v1  ;;  %v2382_v60 = vsub.f32 %v2380_v43, %v2381_v36 }
 0x185   : > { %1758 = vmatmul.mubr.f32.vlgmr.msra.gmra.mxu1 %v9832_v6  ;;  %2015 = vmatmul.mubr.f32.vlgmr.msra.gmra.mxu0 %v9914_v2  ;;  %v3217_v6 = vpop.permute.xlu1 %3216  ;;  %v2389_v2 = vand.u32 4294901760, %v2388_v9 }
 0x186   : > { %1903 = vmatpush1.msra.mxu1 %v1902_v18  ;;  %2134 = vmatpush1.msra.mxu0 %v1900_v31  ;;  %v3222_v8 = vsel %vm3220_vm13, %v3219_v4, %v3217_v6  ;;  %v2383_v11 = vand.u32 4294901760, %v2382_v60  ;;  %v3221_v22 = vsel %vm3220_vm13, %v3217_v6, %v3219_v4  ;;  %v2860_v31 = vsub.f32 %v2858_v16, %v2859_v24 }
 0x187   : > { %2052 = vmatprep.subr.mxu1 %v9917_v5  ;;  %2302 = vmatprep.subr.mxu0 %v9964_v33  ;;  %v3224_v23 = vmul.f32 %v9880_v27, %v3222_v8  ;;  %v3223_v57 = vmul.f32 %v10037_v12, %v3221_v22 }
 0x188   : > { %1936 = vmatprep.mubr.f32.mxu1 %v10889_v1  ;;  %2167 = vmatprep.mubr.f32.mxu0 %v10889_v1 }
 0x189   : > { %1938 = vmatmul.mubr.f32.vlgmr.msra.gmra.mxu1 %v9902_v49  ;;  %2169 = vmatmul.mubr.f32.vlgmr.msra.gmra.mxu0 %v9902_v49  ;;  %v3234_v25 = vsel %vm325_vm1, %v3224_v23, 0  ;;  %v3704_v56 = vpop.permute.xlu1 %3703  ;;  %v3231_v19 = vsel %vm325_vm1, %v3223_v57, 0 }
 0x18a   : > { %2054 = vmatpush1.msra.mxu1 %v9929_v15  ;;  %2304 = vmatpush1.msra.mxu0 %v9977_v40  ;;  %v10079_v29 = vand.u32 4294901760, %v3234_v25  ;;  %v3709_v39 = vsel %vm3707_vm2, %v3706_v54, %v3704_v56  ;;  %v10096_v42 = vand.u32 4294901760, %v3231_v19  ;;  %v3708_v18 = vsel %vm3707_vm2, %v3704_v56, %v3706_v54 }
 0x18b   : > { %2206 = vmatprep.subr.mxu1 %v9917_v5  ;;  %2463 = vmatprep.subr.mxu0 %v2380_v43  ;;  %v3228_v5 = vsel %vm321_vm0, %v9626_v7, 0  ;;  %v3711_v34 = vmul.f32 %v10088_v37, %v3709_v39  ;;  %v3710_v6 = vmul.f32 %v9940_v21, %v3708_v18 }
 0x18c   : > { %2087 = vmatprep.mubr.f32.mxu1 %v10889_v1  ;;  %2337 = vmatprep.mubr.f32.mxu0 %v10889_v1  ;;  %v3351_v50 = vsub.f32 %v3231_v19, %v10096_v42 }
 0x18d   : > { %2091 = vmatmul.mubr.f32.vlgmr.msra.gmra.mxu1 %v1853_v17  ;;  %2343 = vmatmul.mubr.f32.vlgmr.msra.gmra.mxu0 %v2342_v59  ;;  %v10047_v17 = vand.u32 4294901760, %v3228_v5  ;;  %v3721_v55 = vsel %vm325_vm1, %v3711_v34, 0  ;;  %v4191_v59 = vpop.permute.xlu1 %4190  ;;  %v3718_v4 = vsel %vm325_vm1, %v3710_v6, 0 }
 0x18e   : > { %2208 = vmatpush1.msra.mxu1 %v9929_v15  ;;  %2466 = vmatpush1.msra.mxu0 %v9988_v45  ;;  %v2819_v15 = vsub.f32 %v10014_v0, %v2818_v20  ;;  %v2861_v45 = vand.u32 4294901760, %v2860_v31  ;;  %v3352_v60 = vand.u32 4294901760, %v3351_v50  ;;  %v10127_v7 = vand.u32 4294901760, %v3721_v55 }
 0x18f   : > { %2384 = vmatprep.subr.mxu1 %v2383_v11  ;;  %2617 = vmatprep.subr.mxu0 %v2381_v36  ;;  %v10076_v26 = vsub.f32 %v3228_v5, %v10047_v17  ;;  %v3715_v36 = vsel %vm321_vm0, %v9627_v41, 0  ;;  %v4193_v11 = vpop.permute.xlu0 %4192  ;;  %v10142_v5 = vsel %vm10052_vm14, 1.0, %v10889_v1  ;;  %v10147_v23 = vand.u32 4294901760, %v3718_v4 }
 0x190   : > { %2241 = vmatprep.mubr.f32.mxu1 %v10889_v1  ;;  %2499 = vmatprep.mubr.f32.mxu0 %v10889_v1  ;;  %v2820_v30 = vand.u32 4294901760, %v2819_v15  ;;  %10926 = vst [vmem:[#allocation13_spill] sm:$0xff] %v10142_v5  ;;  %v4196_v22 = vsel %vm4194_vm3, %v4193_v11, %v4191_v59  ;;  %v3832_v57 = vsub.f32 %v3721_v55, %v10127_v7 }
 0x191   : > { %2243 = vmatmul.mubr.f32.vlgmr.msra.gmra.mxu1 %v9902_v49  ;;  %2502 = vmatmul.mubr.f32.vlgmr.msra.gmra.mxu0 %v9969_v38  ;;  %v2865_v49 = vand.u32 4294901760, %v2864_v58  ;;  %v3305_v44 = vand.u32 4294901760, %v10076_v26  ;;  %v4195_v56 = vsel %vm4194_vm3, %v4191_v59, %v4193_v11  ;;  %v4678_v19 = vpop.permute.xlu1 %4677 }
 0x192   : > { %2390 = vmatpush1.msra.mxu1 %v2389_v2  ;;  %2621 = vmatpush1.msra.mxu0 %v2387_v52  ;;  %v10118_v52 = vand.u32 4294901760, %v3715_v36  ;;  %v3353_v2 = vsub.f32 %v3351_v50, %v3352_v60  ;;  %v3833_v53 = vand.u32 4294901760, %v3832_v57  ;;  %v4205_v62 = vsel %vm325_vm1, %v4195_v56, 0 }
 0x193   : > { %2539 = vmatprep.subr.mxu1 %v9964_v33  ;;  %2780 = vmatprep.subr.mxu0 %v10011_v61  ;;  %v2866_v43 = vsub.f32 %v2864_v58, %v2865_v49  ;;  %v4680_v41 = vpop.permute.xlu0 %4679  ;;  %v10208_v18 = vand.u32 4294901760, %v4205_v62 }
 0x194   : > { %2423 = vmatprep.mubr.f32.mxu1 %v10889_v1  ;;  %2654 = vmatprep.mubr.f32.mxu0 %v10889_v1  ;;  %v10132_v9 = vsub.f32 %v3715_v36, %v10118_v52  ;;  %v3834_v39 = vsub.f32 %v3832_v57, %v3833_v53 }
 0x195   : > { %2425 = vmatmul.mubr.f32.vlgmr.msra.gmra.mxu1 %v9956_v28  ;;  %2656 = vmatmul.mubr.f32.vlgmr.msra.gmra.mxu0 %v9956_v28  ;;  %v2867_v38 = vand.u32 4294901760, %v2866_v43  ;;  %v10200_v43 = vsel %vm10179_vm5, 1.0, %v10889_v1 }
 0x196   : > { %2541 = vmatpush1.msra.mxu1 %v9977_v40  ;;  %2782 = vmatpush1.msra.mxu0 %v10027_v10  ;;  %v3792_v15 = vand.u32 4294901760, %v10132_v9  ;;  %10929 = vst [vmem:[#allocation14_spill] sm:$0xff] %v10200_v43 }
 0x197   : > { %2693 = vmatprep.subr.mxu1 %v9964_v33  ;;  %2941 = vmatprep.subr.mxu0 %v2858_v16  ;;  %v3345_v33 = vsub.f32 %v3234_v25, %v10079_v29  ;;  %v9628_v16 = vld [vmem:[%s10885_s3 + $0x1c] sm:$0xf]  ;;  %v10159_v25 = vsub.f32 %v3718_v4, %v10147_v23 }
 0x198   : > { %2574 = vmatprep.mubr.f32.mxu1 %v10889_v1  ;;  %2815 = vmatprep.mubr.f32.mxu0 %v10889_v1 }
 0x199   : > { %2578 = vmatmul.mubr.f32.vlgmr.msra.gmra.mxu1 %v2340_v35  ;;  %2821 = vmatmul.mubr.f32.vlgmr.msra.gmra.mxu0 %v2820_v30  ;;  %v3306_v35 = vsub.f32 %v10076_v26, %v3305_v44  ;;  %v3839_v30 = vand.u32 4294901760, %v10159_v25 }
 0x19a   : > { %2695 = vmatpush1.msra.mxu1 %v9977_v40  ;;  %2944 = vmatpush1.msra.mxu0 %v2864_v58  ;;  %v3346_v40 = vand.u32 4294901760, %v3345_v33 }
 0x19b   : > { %2862 = vmatprep.subr.mxu1 %v2861_v45  ;;  %3095 = vmatprep.subr.mxu0 %v2859_v24  ;;  %v4202_v24 = vsel %vm321_vm0, %v9628_v16, 0  ;;  %v4683_v45 = vsel %vm4681_vm6, %v4680_v41, %v4678_v19  ;;  %v3840_v34 = vsub.f32 %v10159_v25, %v3839_v30 }
 0x19c   : > { %2728 = vmatprep.mubr.f32.mxu1 %v10889_v1  ;;  %2977 = vmatprep.mubr.f32.mxu0 %v10889_v1  ;;  %v3347_v8 = vsub.f32 %v3345_v33, %v3346_v40 }
 0x19d   : > { %2730 = vmatmul.mubr.f32.vlgmr.msra.gmra.mxu1 %v9956_v28  ;;  %2980 = vmatmul.mubr.f32.vlgmr.msra.gmra.mxu0 %v10014_v0  ;;  %v3307_v28 = vand.u32 4294901760, %v3306_v35  ;;  %v3354_v0 = vand.u32 4294901760, %v3353_v2  ;;  %v4685_v35 = vmul.f32 %v10200_v43, %v4683_v45 }
 0x19e   : > { %2868 = vmatpush1.msra.mxu1 %v2867_v38  ;;  %3099 = vmatpush1.msra.mxu0 %v2865_v49  ;;  %v3348_v58 = vand.u32 4294901760, %v3347_v8  ;;  %v4682_v38 = vsel %vm4681_vm6, %v4678_v19, %v4680_v41 }
 0x19f   : > { %3017 = vmatprep.subr.mxu1 %v10011_v61  ;;  %3267 = vmatprep.subr.mxu0 %v10079_v29  ;;  %v4684_v55 = vmul.f32 %v10037_v12, %v4682_v38 }
 0x1a0   : > { %2901 = vmatprep.mubr.f32.mxu1 %v10889_v1  ;;  %3132 = vmatprep.mubr.f32.mxu0 %v10889_v1 }
 0x1a1   : > { %2903 = vmatmul.mubr.f32.vlgmr.msra.gmra.mxu1 %v9997_v47  ;;  %3134 = vmatmul.mubr.f32.vlgmr.msra.gmra.mxu0 %v9997_v47 }
 0x1a2   : > { %3019 = vmatpush1.msra.mxu1 %v10027_v10  ;;  %3269 = vmatpush1.msra.mxu0 %v10096_v42 }
 0x1a3   : > { %3171 = vmatprep.subr.mxu1 %v10011_v61  ;;  %3428 = vmatprep.subr.mxu0 %v3345_v33  ;;  %v4198_v61 = vmul.f32 %v10142_v5, %v4196_v22  ;;  %v9629_v33 = vld [vmem:[%s10885_s3 + $0x20] sm:$0xf] }
 0x1a4   : > { %3052 = vmatprep.mubr.f32.mxu1 %v10889_v1  ;;  %3302 = vmatprep.mubr.f32.mxu0 %v10889_v1  ;;  %v4689_v6 = vsel %vm321_vm0, %v9629_v33, 0 }
 0x1a5   : > { %3056 = vmatmul.mubr.f32.vlgmr.msra.gmra.mxu1 %v2818_v20  ;;  %3308 = vmatmul.mubr.f32.vlgmr.msra.gmra.mxu0 %v3307_v28  ;;  %v10163_v20 = vand.u32 4294901760, %v4202_v24  ;;  %v4208_v49 = vsel %vm325_vm1, %v4198_v61, 0  ;;  %v10232_v59 = vand.u32 4294901760, %v4689_v6  ;;  %v4695_v28 = vsel %vm325_vm1, %v4685_v35, 0 }
 0x1a6   : > { %3173 = vmatpush1.msra.mxu1 %v10027_v10  ;;  %3431 = vmatpush1.msra.mxu0 %v3351_v50  ;;  %v3793_v10 = vsub.f32 %v10132_v9, %v3792_v15  ;;  %v10191_v54 = vand.u32 4294901760, %v4208_v49  ;;  %v10240_v8 = vand.u32 4294901760, %v4695_v28 }
 0x1a7   : > { %3349 = vmatprep.subr.mxu1 %v3348_v58  ;;  %3582 = vmatprep.subr.mxu0 %v3346_v40  ;;  %v10188_v31 = vsub.f32 %v4202_v24, %v10163_v20  ;;  %v10245_v16 = vsub.f32 %v4689_v6, %v10232_v59 }
 0x1a8   : > { %3206 = vmatprep.mubr.f32.mxu1 %v10889_v1  ;;  %3464 = vmatprep.mubr.f32.mxu0 %v10889_v1  ;;  %v3794_v63 = vand.u32 4294901760, %v3793_v10  ;;  %v4319_v50 = vsub.f32 %v4208_v49, %v10191_v54 }
 0x1a9   : > { %3208 = vmatmul.mubr.f32.vlgmr.msra.gmra.mxu1 %v9997_v47  ;;  %3467 = vmatmul.mubr.f32.vlgmr.msra.gmra.mxu0 %v10076_v26  ;;  %v4279_v36 = vand.u32 4294901760, %v10188_v31  ;;  %v4325_v26 = vsub.f32 %v4205_v62, %v10208_v18  ;;  %v4766_v24 = vand.u32 4294901760, %v10245_v16 }
 0x1aa   : > { %3355 = vmatpush1.msra.mxu1 %v3354_v0  ;;  %3586 = vmatpush1.msra.mxu0 %v3352_v60 }
 0x1ab   : > { %3504 = vmatprep.subr.mxu1 %v10079_v29  ;;  %3754 = vmatprep.subr.mxu0 %v10127_v7  ;;  %v4280_v40 = vsub.f32 %v10188_v31, %v4279_v36  ;;  %v4326_v60 = vand.u32 4294901760, %v4325_v26 }
 0x1ac   : > { %3388 = vmatprep.mubr.f32.mxu1 %v10889_v1  ;;  %3619 = vmatprep.mubr.f32.mxu0 %v10889_v1 }
 0x1ad   : > { %3390 = vmatmul.mubr.f32.vlgmr.msra.gmra.mxu1 %v10047_v17  ;;  %3621 = vmatmul.mubr.f32.vlgmr.msra.gmra.mxu0 %v10047_v17  ;;  %v4281_v4 = vand.u32 4294901760, %v4280_v40  ;;  %v4327_v2 = vsub.f32 %v4325_v26, %v4326_v60 }
 0x1ae   : > { %3506 = vmatpush1.msra.mxu1 %v10096_v42  ;;  %3756 = vmatpush1.msra.mxu0 %v10147_v23 }
 0x1af   : > { %3658 = vmatprep.subr.mxu1 %v10079_v29  ;;  %3915 = vmatprep.subr.mxu0 %v3832_v57  ;;  %v3835_v29 = vand.u32 4294901760, %v3834_v39  ;;  %v4806_v57 = vsub.f32 %v4695_v28, %v10240_v8  ;;  %v4328_v61 = vand.u32 4294901760, %v4327_v2 }
 0x1b0   : > { %3539 = vmatprep.mubr.f32.mxu1 %v10889_v1  ;;  %3789 = vmatprep.mubr.f32.mxu0 %v10889_v1 }
 0x1b1   : > { %3543 = vmatmul.mubr.f32.vlgmr.msra.gmra.mxu1 %v3305_v44  ;;  %3795 = vmatmul.mubr.f32.vlgmr.msra.gmra.mxu0 %v3794_v63  ;;  %v3841_v44 = vand.u32 4294901760, %v3840_v34 }
 0x1b2   : > { %3660 = vmatpush1.msra.mxu1 %v10096_v42  ;;  %3918 = vmatpush1.msra.mxu0 %v10159_v25  ;;  %v4320_v42 = vand.u32 4294901760, %v4319_v50 }
 0x1b3   : > { %3836 = vmatprep.subr.mxu1 %v3835_v29  ;;  %4069 = vmatprep.subr.mxu0 %v3833_v53 }
 0x1b4   : > { %3693 = vmatprep.mubr.f32.mxu1 %v10889_v1  ;;  %3951 = vmatprep.mubr.f32.mxu0 %v10889_v1  ;;  %v4321_v11 = vsub.f32 %v4319_v50, %v4320_v42 }
 0x1b5   : > { %3695 = vmatmul.mubr.f32.vlgmr.msra.gmra.mxu1 %v10047_v17  ;;  %3954 = vmatmul.mubr.f32.vlgmr.msra.gmra.mxu0 %v10132_v9  ;;  %v4692_v17 = vsel %vm325_vm1, %v4684_v55, 0  ;;  %v4767_v9 = vsub.f32 %v10245_v16, %v4766_v24 }
 0x1b6   : > { %3842 = vmatpush1.msra.mxu1 %v3841_v44  ;;  %4073 = vmatpush1.msra.mxu0 %v3839_v30  ;;  %v4729_v22 = vand.u32 4294901760, %v4692_v17  ;;  %v4322_v58 = vand.u32 4294901760, %v4321_v11 }
 0x1b7   : > { %3991 = vmatprep.subr.mxu1 %v10127_v7  ;;  %4241 = vmatprep.subr.mxu0 %v10191_v54 }
 0x1b8   : > { %3875 = vmatprep.mubr.f32.mxu1 %v10889_v1  ;;  %4106 = vmatprep.mubr.f32.mxu0 %v10889_v1 }
 0x1b9   : > { %3877 = vmatmul.mubr.f32.vlgmr.msra.gmra.mxu1 %v10118_v52  ;;  %4108 = vmatmul.mubr.f32.vlgmr.msra.gmra.mxu0 %v10118_v52 }
 0x1ba   : > { %3993 = vmatpush1.msra.mxu1 %v10147_v23  ;;  %4243 = vmatpush1.msra.mxu0 %v10208_v18 }
 0x1bb   : > { %4145 = vmatprep.subr.mxu1 %v10127_v7  ;;  %4402 = vmatprep.subr.mxu0 %v4319_v50  ;;  %v4812_v7 = vsub.f32 %v4692_v17, %v4729_v22 }
 0x1bc   : > { %4026 = vmatprep.mubr.f32.mxu1 %v10889_v1  ;;  %4276 = vmatprep.mubr.f32.mxu0 %v10889_v1 }
 0x1bd   : > { %4030 = vmatmul.mubr.f32.vlgmr.msra.gmra.mxu1 %v3792_v15  ;;  %4282 = vmatmul.mubr.f32.vlgmr.msra.gmra.mxu0 %v4281_v4  ;;  %v4807_v15 = vand.u32 4294901760, %v4806_v57 }
 0x1be   : > { %4147 = vmatpush1.msra.mxu1 %v10147_v23  ;;  %4405 = vmatpush1.msra.mxu0 %v4325_v26  ;;  %v4813_v23 = vand.u32 4294901760, %v4812_v7 }
 0x1bf   : > { %4323 = vmatprep.subr.mxu1 %v4322_v58  ;;  %4556 = vmatprep.subr.mxu0 %v4320_v42  ;;  %v4808_v25 = vsub.f32 %v4806_v57, %v4807_v15 }
 0x1c0   : > { %4180 = vmatprep.mubr.f32.mxu1 %v10889_v1  ;;  %4438 = vmatprep.mubr.f32.mxu0 %v10889_v1  ;;  %v4814_v0 = vsub.f32 %v4812_v7, %v4813_v23 }
 0x1c1   : > { %4182 = vmatmul.mubr.f32.vlgmr.msra.gmra.mxu1 %v10118_v52  ;;  %4441 = vmatmul.mubr.f32.vlgmr.msra.gmra.mxu0 %v10188_v31  ;;  %v4768_v52 = vand.u32 4294901760, %v4767_v9  ;;  %v4809_v10 = vand.u32 4294901760, %v4808_v25 }
 0x1c2   : > { %4329 = vmatpush1.msra.mxu1 %v4328_v61  ;;  %4560 = vmatpush1.msra.mxu0 %v4326_v60  ;;  %v4815_v53 = vand.u32 4294901760, %v4814_v0 }
 0x1c3   : > { %4478 = vmatprep.subr.mxu1 %v10191_v54  ;;  %4728 = vmatprep.subr.mxu0 %v10240_v8 }
 0x1c4   : > { %4362 = vmatprep.mubr.f32.mxu1 %v10889_v1  ;;  %4593 = vmatprep.mubr.f32.mxu0 %v10889_v1 }
 0x1c5   : > { %4364 = vmatmul.mubr.f32.vlgmr.msra.gmra.mxu1 %v10163_v20  ;;  %4595 = vmatmul.mubr.f32.vlgmr.msra.gmra.mxu0 %v10163_v20 }
 0x1c6   : > { %4480 = vmatpush1.msra.mxu1 %v10208_v18  ;;  %4730 = vmatpush1.msra.mxu0 %v4729_v22 }
 0x1c7   : > { %4632 = vmatprep.subr.mxu1 %v10191_v54  ;;  %4889 = vmatprep.subr.mxu0 %v4806_v57 }
 0x1c8   : > { %4513 = vmatprep.mubr.f32.mxu1 %v10889_v1  ;;  %4763 = vmatprep.mubr.f32.mxu0 %v10889_v1 }
 0x1c9   : > { %4517 = vmatmul.mubr.f32.vlgmr.msra.gmra.mxu1 %v4279_v36  ;;  %4769 = vmatmul.mubr.f32.vlgmr.msra.gmra.mxu0 %v4768_v52 }
 0x1ca   : > { %4634 = vmatpush1.msra.mxu1 %v10208_v18  ;;  %4892 = vmatpush1.msra.mxu0 %v4812_v7 }
 0x1cb   : > { %4810 = vmatprep.subr.mxu1 %v4809_v10  ;;  %5043 = vmatprep.subr.mxu0 %v4807_v15 }
 0x1cc   : > { %4667 = vmatprep.mubr.f32.mxu1 %v10889_v1  ;;  %4925 = vmatprep.mubr.f32.mxu0 %v10889_v1 }
 0x1cd   : > { %4669 = vmatmul.mubr.f32.vlgmr.msra.gmra.mxu1 %v10163_v20  ;;  %4928 = vmatmul.mubr.f32.vlgmr.msra.gmra.mxu0 %v10245_v16 }
 0x1ce   : > { %4816 = vmatpush1.msra.mxu1 %v4815_v53  ;;  %5047 = vmatpush1.msra.mxu0 %v4813_v23 }
 0x1cf   : > { %4965 = vmatprep.subr.mxu1 %v10240_v8  ;;  %4849 = vmatprep.mubr.f32.mxu1 %v10889_v1 }
 0x1d0   : > { %5080 = vmatprep.mubr.f32.mxu0 %v10889_v1 }
 0x1d1   : > { %4851 = vmatmul.mubr.f32.vlgmr.msra.gmra.mxu1 %v10232_v59  ;;  %5082 = vmatmul.mubr.f32.vlgmr.msra.gmra.mxu0 %v10232_v59 }
 0x1d2   : > { %4967 = vmatpush1.msra.mxu1 %v4729_v22  ;;  %5000 = vmatprep.mubr.f32.mxu1 %v10889_v1 }
 0x1d3   : > { %5119 = vmatprep.subr.mxu1 %v10240_v8  ;;  %5267 = vmatprep.mubr.f32.mxu0 %v10889_v1 }
 0x1d5   : > { %5004 = vmatmul.mubr.f32.vlgmr.msra.gmra.mxu1 %v4766_v24 }
 0x1d6   : > { %5121 = vmatpush1.msra.mxu1 %v4729_v22  ;;  %5154 = vmatprep.mubr.f32.mxu1 %v10889_v1 }
 0x1d9   : > { %5156 = vmatmul.mubr.f32.vlgmr.msra.gmra.mxu1 %v10232_v59 }
 0x1da   : > { %5353 = vmatprep.mubr.f32.mxu1 %v10889_v1 }
 0x228   : > { %v898_v20 = vpop.f32.mrf.mxu0 }
 0x22a   : > { %v900_v56 = vpop.f32.mrf.mxu0 }
 0x22c   : > { %v1057_v49 = vpop.f32.mrf.mxu0 }
 0x22e   : > { %v1059_v47 = vpop.f32.mrf.mxu0 }
 0x230   : > { %v1211_v19 = vpop.f32.mrf.mxu0 }
 0x231   : > { %v980_v30 = vpop.f32.mrf.mxu1 }
 0x232   : > { %v981_v31 = vadd.f32 %v980_v30, %v898_v20  ;;  %v1213_v62 = vpop.f32.mrf.mxu0 }
 0x233   : > { %v982_v54 = vpop.f32.mrf.mxu1 }
 0x234   : > { %v1058_v63 = vadd.f32 %v1057_v49, %v981_v31  ;;  %v983_v39 = vadd.f32 %v982_v54, %v900_v56 }
 0x235   : > { %v1133_v41 = vpop.f32.mrf.mxu1  ;;  %v1372_v45 = vpop.f32.mrf.mxu0 }
 0x236   : > { %v1060_v33 = vadd.f32 %v1059_v47, %v983_v39  ;;  %v1134_v18 = vadd.f32 %v1133_v41, %v1058_v63 }
 0x237   : > { %v1135_v34 = vpop.f32.mrf.mxu1  ;;  %v1374_v36 = vpop.f32.mrf.mxu0 }
 0x238   : > { %v1212_v29 = vadd.f32 %v1211_v19, %v1134_v18  ;;  %v1136_v50 = vadd.f32 %v1135_v34, %v1060_v33 }
 0x239   : > { %v1285_v38 = vpop.f32.mrf.mxu1  ;;  %v1531_v35 = vpop.f32.mrf.mxu0 }
 0x23a   : > { %v1214_v6 = vadd.f32 %v1213_v62, %v1136_v50  ;;  %v1286_v26 = vadd.f32 %v1285_v38, %v1212_v29 }
 0x23b   : > { %v1287_v44 = vpop.f32.mrf.mxu1  ;;  %v1533_v40 = vpop.f32.mrf.mxu0 }
 0x23c   : > { %v1373_v55 = vadd.f32 %v1372_v45, %v1286_v26  ;;  %v1288_v42 = vadd.f32 %v1287_v44, %v1214_v6 }
 0x23d   : > { %v1454_v59 = vpop.f32.mrf.mxu1  ;;  %v1685_v28 = vpop.f32.mrf.mxu0 }
 0x23e   : > { %v1375_v60 = vadd.f32 %v1374_v36, %v1288_v42  ;;  %v1455_v4 = vadd.f32 %v1454_v59, %v1373_v55 }
 0x23f   : > { %v1456_v17 = vpop.f32.mrf.mxu1  ;;  %v1687_v8 = vpop.f32.mrf.mxu0 }
 0x240   : > { %v1532_v11 = vadd.f32 %v1531_v35, %v1455_v4  ;;  %v1457_v16 = vadd.f32 %v1456_v17, %v1375_v60 }
 0x241   : > { %v1607_v22 = vpop.f32.mrf.mxu1  ;;  %v10290_v2 = vpop.f32.mrf.mxu0 }
 0x242   : > { %v1534_v58 = vadd.f32 %v1533_v40, %v1457_v16  ;;  %v1608_v57 = vadd.f32 %v1607_v22, %v1532_v11 }
 0x243   : > { %v1609_v24 = vpop.f32.mrf.mxu1  ;;  %v10292_v7 = vpop.f32.mrf.mxu0 }
 0x244   : > { %v1686_v61 = vadd.f32 %v1685_v28, %v1608_v57  ;;  %v1610_v9 = vadd.f32 %v1609_v24, %v1534_v58 }
 0x245   : > { %v1759_v15 = vpop.f32.mrf.mxu1  ;;  %v10294_v23 = vpop.f32.mrf.mxu0 }
 0x246   : > { %v1688_v52 = vadd.f32 %v1687_v8, %v1610_v9  ;;  %v10296_v25 = vadd.f32 %v1759_v15, %v1686_v61 }
 0x247   : > { %v1761_v0 = vpop.f32.mrf.mxu1  ;;  %v10298_v10 = vpop.f32.mrf.mxu0 }
 0x248   : > { %v10300_v53 = vadd.f32 %v1761_v0, %v1688_v52 }
 0x249   : > { %v1939_v20 = vpop.f32.mrf.mxu1  ;;  %v10302_v56 = vpop.f32.mrf.mxu0 }
 0x24a   : > { %10930 = vst [vmem:[#allocation15_spill] sm:$0xff] %v10300_v53  ;;  %v1940_v12 = vadd.f32 %v1939_v20, %v10290_v2 }
 0x24b   : > { %v1941_v49 = vpop.f32.mrf.mxu1  ;;  %v10304_v47 = vpop.f32.mrf.mxu0 }
 0x24c   : > { %v1942_v27 = vadd.f32 %v1941_v49, %v10292_v7  ;;  %v2017_v51 = vadd.f32 %v10294_v23, %v1940_v12 }
 0x24d   : > { %v10306_v19 = vpop.f32.mrf.mxu1  ;;  %v2344_v30 = vpop.f32.mrf.mxu0 }
 0x24f   : > { %v10308_v31 = vpop.f32.mrf.mxu1  ;;  %v2346_v62 = vpop.f32.mrf.mxu0 }
 0x251   : > { %v10310_v54 = vpop.f32.mrf.mxu1  ;;  %v2503_v63 = vpop.f32.mrf.mxu0 }
 0x253   : > { %v10312_v39 = vpop.f32.mrf.mxu1  ;;  %v2505_v41 = vpop.f32.mrf.mxu0 }
 0x255   : > { %v2426_v45 = vpop.f32.mrf.mxu1  ;;  %v10314_v33 = vpop.f32.mrf.mxu0 }
 0x256   : > { %v2427_v14 = vadd.f32 %v2426_v45, %v2344_v30 }
 0x257   : > { %v2428_v18 = vpop.f32.mrf.mxu1  ;;  %v10316_v34 = vpop.f32.mrf.mxu0 }
 0x259   : > { %v2579_v36 = vpop.f32.mrf.mxu1  ;;  %v2822_v29 = vpop.f32.mrf.mxu0 }
 0x25b   : > { %v10318_v50 = vpop.f32.mrf.mxu1  ;;  %v2824_v38 = vpop.f32.mrf.mxu0 }
 0x25d   : > { %v10320_v35 = vpop.f32.mrf.mxu1  ;;  %v2981_v6 = vpop.f32.mrf.mxu0 }
 0x25f   : > { %v10322_v26 = vpop.f32.mrf.mxu1  ;;  %v2983_v44 = vpop.f32.mrf.mxu0 }
 0x260   : > { %10931 = vst [vmem:[#allocation16_spill] sm:$0xff] %v10322_v26 }
 0x261   : > { %v2904_v40 = vpop.f32.mrf.mxu1  ;;  %v10324_v55 = vpop.f32.mrf.mxu0 }
 0x263   : > { %v2906_v42 = vpop.f32.mrf.mxu1  ;;  %v10326_v59 = vpop.f32.mrf.mxu0 }
 0x265   : > { %v3057_v28 = vpop.f32.mrf.mxu1  ;;  %v3309_v60 = vpop.f32.mrf.mxu0 }
 0x267   : > { %v10328_v4 = vpop.f32.mrf.mxu1  ;;  %v3311_v17 = vpop.f32.mrf.mxu0 }
 0x269   : > { %v10330_v8 = vpop.f32.mrf.mxu1  ;;  %v3468_v11 = vpop.f32.mrf.mxu0 }
 0x26a   : > { %10932 = vst [vmem:[#allocation17_spill] sm:$0xff] %v10330_v8  ;;  %v2504_v8 = vadd.f32 %v2503_v63, %v2427_v14 }
 0x26b   : > { %v10332_v16 = vpop.f32.mrf.mxu1  ;;  %v3470_v22 = vpop.f32.mrf.mxu0 }
 0x26c   : > { %10933 = vst [vmem:[#allocation18_spill] sm:$0xff] %v10332_v16  ;;  %v2905_v16 = vadd.f32 %v2904_v40, %v2822_v29 }
 0x26d   : > { %v3391_v58 = vpop.f32.mrf.mxu1  ;;  %v10334_v57 = vpop.f32.mrf.mxu0 }
 0x26e   : > { %v3392_v26 = vadd.f32 %v3391_v58, %v3309_v60  ;;  %v2982_v49 = vadd.f32 %v2981_v6, %v2905_v16 }
 0x26f   : > { %v3393_v24 = vpop.f32.mrf.mxu1  ;;  %v10336_v61 = vpop.f32.mrf.mxu0 }
 0x270   : > { %10934 = vst [vmem:[#allocation19_spill] sm:$0xff] %v10336_v61  ;;  %v2019_v61 = vadd.f32 %v10298_v10, %v1942_v27  ;;  %v3394_v30 = vadd.f32 %v3393_v24, %v3311_v17  ;;  %v3469_v27 = vadd.f32 %v3468_v11, %v3392_v26 }
 0x271   : > { %v3544_v9 = vpop.f32.mrf.mxu1  ;;  %v3796_v15 = vpop.f32.mrf.mxu0  ;;  %v10940_v24 = vld [vmem:[#allocation17_spill] sm:$0xff] }
 0x273   : > { %v3546_v52 = vpop.f32.mrf.mxu1  ;;  %v3798_v0 = vpop.f32.mrf.mxu0 }
 0x275   : > { %v10338_v1 = vpop.f32.mrf.mxu1  ;;  %v3955_v48 = vpop.f32.mrf.mxu0 }
 0x276   : > { %10935 = vst [vmem:[#allocation20_spill] sm:$0xff] %v10338_v1  ;;  %v2429_v1 = vadd.f32 %v2428_v18, %v2346_v62  ;;  %v2095_v62 = vadd.f32 %v10308_v31, %v2019_v61  ;;  %v2580_v18 = vadd.f32 %v2579_v36, %v2504_v8  ;;  %v3545_v36 = vadd.f32 %v3544_v9, %v3469_v27 }
 0x277   : > { %v10340_v46 = vpop.f32.mrf.mxu1  ;;  %v3957_v43 = vpop.f32.mrf.mxu0 }
 0x278   : > { %10936 = vst [vmem:[#allocation21_spill] sm:$0xff] %v10340_v46  ;;  %v2506_v7 = vadd.f32 %v2505_v41, %v2429_v1  ;;  %v3058_v1 = vadd.f32 %v3057_v28, %v2982_v49  ;;  %v2658_v31 = vadd.f32 %v10314_v33, %v2580_v18 }
 0x279   : > { %v3878_v5 = vpop.f32.mrf.mxu1  ;;  %v10342_v37 = vpop.f32.mrf.mxu0 }
 0x27a   : > { %10937 = vst [vmem:[#allocation22_spill] sm:$0xff] %v10342_v37  ;;  %v2907_v37 = vadd.f32 %v2906_v42, %v2824_v38  ;;  %v3879_v23 = vadd.f32 %v3878_v5, %v3796_v15  ;;  %v2173_v5 = vadd.f32 %v10304_v47, %v2095_v62 }
 0x27b   : > { %v3880_v21 = vpop.f32.mrf.mxu1  ;;  %v10345_v32 = vpop.f32.mrf.mxu0 }
 0x27c   : > { %10938 = vst [vmem:[#allocation23_spill] sm:$0xff] %v10345_v32  ;;  %v2093_v32 = vadd.f32 %v10306_v19, %v2017_v51  ;;  %v2984_v29 = vadd.f32 %v2983_v44, %v2907_v37  ;;  %v3881_v63 = vadd.f32 %v3880_v21, %v3798_v0  ;;  %v2582_v51 = vadd.f32 %v10318_v50, %v2506_v7  ;;  %v10943_v0 = vld [vmem:[#allocation15_spill] sm:$0xff] }
 0x27d   : > { %v4031_v13 = vpop.f32.mrf.mxu1  ;;  %v4283_v3 = vpop.f32.mrf.mxu0  ;;  %v3471_v19 = vadd.f32 %v3470_v22, %v3394_v30  ;;  %v3956_v42 = vadd.f32 %v3955_v48, %v3879_v23  ;;  %v3136_v50 = vadd.f32 %v10324_v55, %v3058_v1  ;;  %v2247_v33 = vadd.f32 %v10312_v39, %v2173_v5  ;;  %v10939_v55 = vld [vmem:[#allocation16_spill] sm:$0xff] }
 0x27e   : > { %v2171_v40 = vadd.f32 %v10302_v56, %v2093_v32  ;;  %v3060_v37 = vadd.f32 %v10328_v4, %v2984_v29  ;;  %v2660_v56 = vadd.f32 %v10316_v34, %v2582_v51  ;;  %v2732_v4 = vadd.f32 %v10320_v35, %v2658_v31  ;;  %v10945_v49 = vld [vmem:[#allocation20_spill] sm:$0xff] }
 0x27f   : > { %v4033_v53 = vpop.f32.mrf.mxu1  ;;  %v4285_v46 = vpop.f32.mrf.mxu0  ;;  %v3547_v28 = vadd.f32 %v3546_v52, %v3471_v19  ;;  %v4032_v17 = vadd.f32 %v4031_v13, %v3956_v42  ;;  %v3210_v61 = vadd.f32 %v10940_v24, %v3136_v50  ;;  %v10941_v13 = vld [vmem:[#allocation19_spill] sm:$0xff]  ;;  %v5181_v24 = vld [vmem:[%s10887_s5] sm:$0xf] }
 0x280   : > { %v2245_v32 = vadd.f32 %v10310_v54, %v2171_v40  ;;  %v3138_v8 = vadd.f32 %v10326_v59, %v3060_v37  ;;  %v2734_v58 = vadd.f32 %v10939_v55, %v2660_v56  ;;  %v2250_v59 = vadd.f32 %v2247_v33, %v10943_v0 }
 0x281   : > { %v10350_v2 = vpop.f32.mrf.mxu1  ;;  %v4442_v20 = vpop.f32.mrf.mxu0  ;;  %v3625_v9 = vadd.f32 %v10941_v13, %v3547_v28  ;;  %v10942_v39 = vld [vmem:[#allocation22_spill] sm:$0xff]  ;;  %v5667_v13 = vsel %vm321_vm0, %v5181_v24, 0 }
 0x282   : > { %v2249_v34 = vadd.f32 %v2245_v32, %v10296_v25  ;;  %v4110_v52 = vadd.f32 %v10942_v39, %v4032_v17  ;;  %v2737_v29 = vadd.f32 %v2734_v58, %v2250_v59 }
 0x283   : > { %v10353_v45 = vpop.f32.mrf.mxu1  ;;  %v4444_v12 = vpop.f32.mrf.mxu0  ;;  %v10946_v25 = vld [vmem:[#allocation23_spill] sm:$0xff] }
 0x284   : > { %v4184_v40 = vadd.f32 %v10350_v2, %v4110_v52  ;;  %v10433_v52 = vand.u32 4294901760, %v5667_v13 }
 0x285   : > { %v4365_v14 = vpop.f32.mrf.mxu1  ;;  %v4596_v10 = vpop.f32.mrf.mxu0 }
 0x286   : > { %v4366_v38 = vadd.f32 %v4365_v14, %v4283_v3  ;;  %v3958_v3 = vadd.f32 %v3957_v43, %v3881_v63  ;;  %v3623_v43 = vadd.f32 %v10334_v57, %v3545_v36  ;;  %v10944_v57 = vld [vmem:[#allocation18_spill] sm:$0xff]  ;;  %v10947_v14 = vld [vmem:[#allocation21_spill] sm:$0xff] }
 0x287   : > { %v4367_v41 = vpop.f32.mrf.mxu1  ;;  %v4598_v6 = vpop.f32.mrf.mxu0  ;;  %v3212_v7 = vadd.f32 %v10944_v57, %v3138_v8  ;;  %v3699_v63 = vadd.f32 %v10947_v14, %v3625_v9  ;;  %v10950_v14 = vld [vmem:[#allocation6_spill] sm:$0xff] }
 0x288   : > { %v4368_v60 = vadd.f32 %v4367_v41, %v4285_v46  ;;  %v4443_v44 = vadd.f32 %v4442_v20, %v4366_v38  ;;  %v4034_v54 = vadd.f32 %v4033_v53, %v3958_v3  ;;  %v2736_v20 = vadd.f32 %v2732_v4, %v2249_v34 }
 0x289   : > { %v4518_v26 = vpop.f32.mrf.mxu1  ;;  %v4770_v21 = vpop.f32.mrf.mxu0  ;;  %v3697_v53 = vadd.f32 %v10945_v49, %v3623_v43  ;;  %v3215_v41 = vadd.f32 %v3212_v7, %v2737_v29 }
 0x28a   : > { %v4445_v47 = vadd.f32 %v4444_v12, %v4368_v60  ;;  %v4519_v22 = vadd.f32 %v4518_v26, %v4443_v44  ;;  %v4112_v23 = vadd.f32 %v10946_v25, %v4034_v54  ;;  %v3214_v27 = vadd.f32 %v3210_v61, %v2736_v20  ;;  %v10949_v20 = vld [vmem:[#allocation5_spill] sm:$0xff] }
 0x28b   : > { %v4520_v48 = vpop.f32.mrf.mxu1  ;;  %v4772_v46 = vpop.f32.mrf.mxu0  ;;  %v3702_v26 = vadd.f32 %v3699_v63, %v3215_v41 }
 0x28c   : > { %v4521_v35 = vadd.f32 %v4520_v48, %v4445_v47  ;;  %v4597_v62 = vadd.f32 %v4596_v10, %v4519_v22  ;;  %v3701_v42 = vadd.f32 %v3697_v53, %v3214_v27  ;;  %v4186_v31 = vadd.f32 %v10353_v45, %v4112_v23  ;;  %v5167_v47 = vpop.permute.xlu1 %5166  ;;  %v9630_v22 = vld [vmem:[%s10887_s5 + $0x4] sm:$0xf] }
 0x28d   : > { %v4670_v11 = vpop.f32.mrf.mxu1  ;;  %v4929_v16 = vpop.f32.mrf.mxu0  ;;  %v5193_v34 = vsel %vm321_vm0, %v9630_v22, 0  ;;  %v10445_v23 = vsub.f32 %v5667_v13, %v10433_v52 }
 0x28e   : > { %v4599_v51 = vadd.f32 %v4598_v6, %v4521_v35  ;;  %v4671_v37 = vadd.f32 %v4670_v11, %v4597_v62  ;;  %v4188_v3 = vadd.f32 %v4184_v40, %v3701_v42  ;;  %v4189_v6 = vadd.f32 %v4186_v31, %v3702_v26 }
 0x28f   : > { %v4672_v15 = vpop.f32.mrf.mxu1  ;;  %v4931_v12 = vpop.f32.mrf.mxu0  ;;  %v10420_v55 = vand.u32 4294901760, %v5193_v34  ;;  %v5744_v31 = vand.u32 4294901760, %v10445_v23  ;;  %v10952_v26 = vmov 0.0  }
 0x290   : > { %v4673_v44 = vadd.f32 %v4672_v15, %v4599_v51  ;;  %v4675_v28 = vadd.f32 %v4671_v37, %v4188_v3  ;;  %v9631_v51 = vld [vmem:[%s10887_s5 + $0x8] sm:$0xf] }
 0x291   : > { %v4852_v30 = vpop.f32.mrf.mxu1  ;;  %v5083_v5 = vpop.f32.mrf.mxu0  ;;  %v10423_v58 = vsub.f32 %v5193_v34, %v10420_v55 }
 0x292   : > { %v4853_v18 = vadd.f32 %v4852_v30, %v4770_v21  ;;  %v4676_v33 = vadd.f32 %v4673_v44, %v4189_v6  ;;  %v10953_v44 = vld [vmem:[#allocation8_spill] sm:$0xff] }
 0x293   : > { %v4854_v38 = vpop.f32.mrf.mxu1  ;;  %v5085_v50 = vpop.f32.mrf.mxu0  ;;  %v5270_v61 = vand.u32 4294901760, %v10423_v58 }
 0x294   : > { %v4930_v1 = vadd.f32 %v4929_v16, %v4853_v18  ;;  %v4855_v19 = vadd.f32 %v4854_v38, %v4772_v46  ;;  %v10951_v38 = vld [vmem:[#allocation7_spill] sm:$0xff] }
 0x295   : > { %v5005_v60 = vpop.f32.mrf.mxu1  ;;  %v5271_v39 = vsub.f32 %v10423_v58, %v5270_v61 }
 0x296   : > { %v4932_v36 = vadd.f32 %v4931_v12, %v4855_v19  ;;  %v5006_v10 = vadd.f32 %v5005_v60, %v4930_v1 }
 0x297   : > { %v5007_v21 = vpop.f32.mrf.mxu1  ;;  %v5272_v25 = vand.u32 4294901760, %v5271_v39 }
 0x298   : > { %v5084_v32 = vadd.f32 %v5083_v5, %v5006_v10  ;;  %v5008_v56 = vadd.f32 %v5007_v21, %v4932_v36  ;;  %v6151_v21 = vsel %vm321_vm0, %v9631_v51, 0 }
 0x299   : > { %v5157_v2 = vpop.f32.mrf.mxu1 }
 0x29a   : > { %v5086_v48 = vadd.f32 %v5085_v50, %v5008_v56  ;;  %v5158_v46 = vadd.f32 %v5157_v2, %v5084_v32 }
 0x29b   : > { %v5159_v17 = vpop.f32.mrf.mxu1 }
 0x29c   : > { %v5162_v4 = vadd.f32 %v5158_v46, %v4675_v28  ;;  %v5160_v45 = vadd.f32 %v5159_v17, %v5086_v48  ;;  %v10479_v46 = vand.u32 4294901760, %v6151_v21  ;;  %v10954_v17 = vld [vmem:[#allocation9_spill] sm:$0xff] }
 0x29e   : > { %v5163_v8 = vadd.f32 %v5160_v45, %v4676_v33  ;;  %v5169_v43 = vadd.f32 %v5167_v47, %v5162_v4  ;;  %v5745_v33 = vsub.f32 %v10445_v23, %v5744_v31  ;;  %v10490_v22 = vsub.f32 %v6151_v21, %v10479_v46 }
 0x2a0   : > { %v5170_v11 = vadd.f32 %v5167_v47, %v5163_v8  ;;  %v10380_v16 = vmax.f32 %v5169_v43, 0.0  ;;  %v5746_v13 = vand.u32 4294901760, %v5745_v33 }
 0x2a2   : > { %v10382_v54 = vmax.f32 %v5170_v11, 0.0  ;;  %5182 = vrot.lane.b32.xlu0 %v10380_v16, %s9671_s8 }
 0x2a4   : > { %5184 = vrot.lane.b32.xlu1 %v10382_v54, %s9671_s8 }
 0x2a6   : > { %5173 = vrot.lane.b32.xlu0 %v10380_v16, %s9672_s9 }
 0x2a8   : > { %5175 = vrot.lane.b32.xlu1 %v10382_v54, %s9672_s9 }
 0x2aa   : > { %6140 = vrot.lane.b32.xlu0 %v10380_v16, %s9673_s10 }
 0x2ac   : > { %6142 = vrot.lane.b32.xlu1 %v10382_v54, %s9673_s10 }
 0x2ae   : > { %6626 = vrot.lane.b32.xlu0 %v10380_v16, %s9674_s11 }
 0x2b0   : > { %6628 = vrot.lane.b32.xlu1 %v10382_v54, %s9674_s11 }
 0x2b2   : > { %7590 = vrot.lane.b32.xlu0 %v10380_v16, %s9675_s12 }
 0x2b4   : > { %7592 = vrot.lane.b32.xlu1 %v10382_v54, %s9675_s12 }
 0x2b6   : > { %8076 = vrot.lane.b32.xlu0 %v10380_v16, %s9676_s13 }
 0x2b8   : > { %8078 = vrot.lane.b32.xlu1 %v10382_v54, %s9676_s13 }
 0x2ba   : > { %8562 = vrot.lane.b32.xlu0 %v10380_v16, %s9677_s14 }
 0x2bc   : > { %8564 = vrot.lane.b32.xlu1 %v10382_v54, %s9677_s14 }
 0x2be   : > { %9048 = vrot.lane.b32.xlu0 %v10380_v16, %s9678_s15 }
 0x2c0   : > { %9050 = vrot.lane.b32.xlu1 %v10382_v54, %s9678_s15 }
 0x314   : > { %v5183_v9 = vpop.permute.xlu0 %5182 }
 0x316   : > { %v5185_v15 = vpop.permute.xlu1 %5184 }
 0x317   : > { %v5186_v0 = vsel %vm809_vm4, %v5183_v9, %v5185_v15  ;;  %v5187_v59 = vsel %vm809_vm4, %v5185_v15, %v5183_v9 }
 0x318   : > { %v5188_v57 = vmul.f32 %v10949_v20, %v5187_v59  ;;  %v5199_v7 = vsel %vm325_vm1, %v5186_v0, 0  ;;  %v5174_v49 = vpop.permute.xlu0 %5173  ;;  %v9632_v0 = vld [vmem:[%s10887_s5 + $0xc] sm:$0xf] }
 0x319   : > { %v10441_v53 = vand.u32 4294901760, %v5199_v7 }
 0x31a   : > { %v5196_v30 = vsel %vm325_vm1, %v5188_v57, 0  ;;  %v5176_v12 = vpop.permute.xlu1 %5175  ;;  %v6228_v57 = vand.u32 4294901760, %v10490_v22 }
 0x31b   : > { %v10447_v62 = vand.u32 4294901760, %v5196_v30  ;;  %v5310_v18 = vsub.f32 %v5199_v7, %v10441_v53  ;;  %v5177_v29 = vsel %vm799_vm7, %v5174_v49, %v5176_v12  ;;  %v5178_v27 = vsel %vm799_vm7, %v5176_v12, %v5174_v49  ;;  %5232 = vmatprep.subr.mxu0 %v10441_v53 }
 0x31c   : > { %v5179_v63 = vmul.f32 %v10950_v14, %v5178_v27  ;;  %v5180_v40 = vmul.f32 %v10951_v38, %v5177_v29  ;;  %v6141_v60 = vpop.permute.xlu0 %6140  ;;  %v6637_v12 = vsel %vm321_vm0, %v9632_v0, 0 }
 0x31d   : > { %v5316_v1 = vsub.f32 %v5196_v30, %v10447_v62  ;;  %5234 = vmatpush1.msra.mxu0 %v10447_v62  ;;  %v5311_v19 = vand.u32 4294901760, %v5310_v18  ;;  %v10527_v27 = vand.u32 4294901760, %v6637_v12 }
 0x31e   : > { %v5670_v41 = vsel %vm325_vm1, %v5179_v63, 0  ;;  %v5673_v42 = vsel %vm325_vm1, %v5180_v40, 0  ;;  %5273 = vmatmul.mubr.f32.vlgmr.msra.gmra.mxu0 %v5272_v25  ;;  %5393 = vmatprep.subr.mxu0 %v5310_v18  ;;  %v6143_v5 = vpop.permute.xlu1 %6142 }
 0x31f   : > { %v10465_v37 = vand.u32 4294901760, %v5673_v42  ;;  %v10467_v36 = vand.u32 4294901760, %v5670_v41  ;;  %v6144_v10 = vsel %vm1768_vm11, %v6141_v60, %v6143_v5  ;;  %5396 = vmatpush1.msra.mxu0 %v5316_v1  ;;  %5429 = vmatprep.mubr.f32.mxu0 %v10952_v26  ;;  %v6145_v3 = vsel %vm1768_vm11, %v6143_v5, %v6141_v60 }
 0x320   : > { %v6147_v32 = vmul.f32 %v10953_v44, %v6144_v10  ;;  %5547 = vmatprep.subr.mxu0 %v5311_v19  ;;  %v5317_v56 = vand.u32 4294901760, %v5316_v1  ;;  %v5312_v50 = vsub.f32 %v5310_v18, %v5311_v19  ;;  %v6146_v47 = vmul.f32 %v10954_v17, %v6145_v3  ;;  %v6627_v15 = vpop.permute.xlu0 %6626  ;;  %v10955_v18 = vld [vmem:[#allocation10_spill] sm:$0xff]  ;;  %v9633_v19 = vld [vmem:[%s10887_s5 + $0x10] sm:$0xf] }
 0x321   : > { %v5784_v2 = vsub.f32 %v5673_v42, %v10465_v37  ;;  %v5790_v6 = vsub.f32 %v5670_v41, %v10467_v36  ;;  %v7115_v10 = vsel %vm321_vm0, %v9633_v19, 0 }
 0x322   : > { %5432 = vmatmul.mubr.f32.vlgmr.msra.gmra.mxu0 %v10423_v58  ;;  %v5313_v28 = vand.u32 4294901760, %v5312_v50  ;;  %v5318_v48 = vsub.f32 %v5316_v1, %v5317_v56  ;;  %v6157_v4 = vsel %vm325_vm1, %v6147_v32, 0  ;;  %v6629_v43 = vpop.permute.xlu1 %6628  ;;  %v6154_v34 = vsel %vm325_vm1, %v6146_v47, 0 }
 0x323   : > { %5551 = vmatpush1.msra.mxu0 %v5317_v56  ;;  %5584 = vmatprep.mubr.f32.mxu0 %v10952_v26  ;;  %v5785_v8 = vand.u32 4294901760, %v5784_v2  ;;  %v5791_v11 = vand.u32 4294901760, %v5790_v6  ;;  %v10493_v24 = vand.u32 4294901760, %v6157_v4  ;;  %v6630_v39 = vsel %vm2255_vm12, %v6627_v15, %v6629_v43 }
 0x324   : > { %5314 = vmatprep.subr.mxu1 %v5313_v28  ;;  %5706 = vmatprep.subr.mxu0 %v10465_v37  ;;  %v5319_v45 = vand.u32 4294901760, %v5318_v48  ;;  %v10505_v59 = vand.u32 4294901760, %v6154_v34  ;;  %v6633_v30 = vmul.f32 %v10951_v38, %v6630_v39  ;;  %v10540_v1 = vsub.f32 %v6637_v12, %v10527_v27  ;;  %v7591_v48 = vpop.permute.xlu0 %7590 }
 0x325   : > { %v5786_v9 = vsub.f32 %v5784_v2, %v5785_v8  ;;  %v5792_v20 = vsub.f32 %v5790_v6, %v5791_v11  ;;  %v6268_v49 = vsub.f32 %v6157_v4, %v10493_v24  ;;  %v10566_v3 = vand.u32 4294901760, %v7115_v10 }
 0x326   : > { %5320 = vmatpush1.msra.mxu1 %v5319_v45  ;;  %5586 = vmatmul.mubr.f32.vlgmr.msra.gmra.mxu0 %v10420_v55  ;;  %v6274_v25 = vsub.f32 %v6154_v34, %v10505_v59  ;;  %v6643_v14 = vsel %vm325_vm1, %v6633_v30, 0  ;;  %v7121_v32 = vsel %vm325_vm1, %v10382_v54, 0  ;;  %v7593_v56 = vpop.permute.xlu1 %7592  ;;  %v7118_v50 = vsel %vm325_vm1, %v10380_v16, 0  ;;  %v9634_v16 = vld [vmem:[%s10887_s5 + $0x14] sm:$0xf] }
 0x327   : > { %5355 = vmatmul.mubr.f32.vlgmr.msra.gmra.mxu1 %v10420_v55  ;;  %5469 = vmatprep.subr.mxu1 %v10441_v53  ;;  %v5787_v7 = vand.u32 4294901760, %v5786_v9  ;;  %v5793_v58 = vand.u32 4294901760, %v5792_v20  ;;  %v10535_v40 = vand.u32 4294901760, %v6643_v14  ;;  %v10578_v54 = vand.u32 4294901760, %v7121_v32  ;;  %v10956_v9 = vld [vmem:[#allocation11_spill] sm:$0xff] }
 0x328   : > { %5708 = vmatpush1.msra.mxu0 %v10467_v36  ;;  %5471 = vmatpush1.msra.mxu1 %v10447_v62  ;;  %v6275_v38 = vand.u32 4294901760, %v6274_v25  ;;  %v10581_v28 = vsub.f32 %v7115_v10, %v10566_v3  ;;  %v7595_v17 = vsel %vm3220_vm13, %v7593_v56, %v7591_v48  ;;  %v10593_v33 = vand.u32 4294901760, %v7118_v50  ;;  %v8077_v30 = vpop.permute.xlu0 %8076 }
 0x329   : > { %5867 = vmatprep.subr.mxu0 %v5784_v2  ;;  %5623 = vmatprep.subr.mxu1 %v10441_v53  ;;  %v6631_v53 = vsel %vm2255_vm12, %v6629_v43, %v6627_v15  ;;  %v6754_v5 = vsub.f32 %v6643_v14, %v10535_v40  ;;  %v7232_v45 = vsub.f32 %v7121_v32, %v10578_v54  ;;  %v7601_v43 = vsel %vm321_vm0, %v9634_v16, 0  ;;  %v9636_v32 = vld [vmem:[%s10887_s5 + $0x1c] sm:$0xf] }
 0x32a   : > { %5504 = vmatprep.mubr.f32.mxu1 %v10952_v26  ;;  %5741 = vmatprep.mubr.f32.mxu0 %v10952_v26  ;;  %v6632_v29 = vmul.f32 %v10955_v18, %v6631_v53  ;;  %v6276_v42 = vsub.f32 %v6274_v25, %v6275_v38  ;;  %v7597_v34 = vmul.f32 %v10953_v44, %v7595_v17  ;;  %v8573_v16 = vsel %vm321_vm0, %v9636_v32, 0 }
 0x32b   : > { %5508 = vmatmul.mubr.f32.vlgmr.msra.gmra.mxu1 %v5270_v61  ;;  %5747 = vmatmul.mubr.f32.vlgmr.msra.gmra.mxu0 %v5746_v13  ;;  %v6229_v61 = vsub.f32 %v10490_v22, %v6228_v57  ;;  %v10607_v13 = vand.u32 4294901760, %v7601_v43  ;;  %v7233_v39 = vand.u32 4294901760, %v7232_v45 }
 0x32c   : > { %5625 = vmatpush1.msra.mxu1 %v10447_v62  ;;  %5870 = vmatpush1.msra.mxu0 %v5790_v6  ;;  %v6269_v62 = vand.u32 4294901760, %v6268_v49  ;;  %v7607_v0 = vsel %vm325_vm1, %v7597_v34, 0 }
 0x32d   : > { %5788 = vmatprep.subr.mxu1 %v5787_v7  ;;  %6021 = vmatprep.subr.mxu0 %v5785_v8  ;;  %v6230_v63 = vand.u32 4294901760, %v6229_v61  ;;  %v7192_v8 = vand.u32 4294901760, %v10581_v28  ;;  %v10621_v20 = vsub.f32 %v7601_v43, %v10607_v13  ;;  %v10624_v7 = vand.u32 4294901760, %v7607_v0 }
 0x32e   : > { %5658 = vmatprep.mubr.f32.mxu1 %v10952_v26  ;;  %5903 = vmatprep.mubr.f32.mxu0 %v10952_v26  ;;  %v6270_v51 = vsub.f32 %v6268_v49, %v6269_v62  ;;  %v7234_v53 = vsub.f32 %v7232_v45, %v7233_v39 }
 0x32f   : > { %5660 = vmatmul.mubr.f32.vlgmr.msra.gmra.mxu1 %v10420_v55  ;;  %5906 = vmatmul.mubr.f32.vlgmr.msra.gmra.mxu0 %v10445_v23  ;;  %v6640_v55 = vsel %vm325_vm1, %v6632_v29, 0  ;;  %v6277_v23 = vand.u32 4294901760, %v6276_v42  ;;  %v7193_v44 = vsub.f32 %v10581_v28, %v7192_v8  ;;  %v7678_v29 = vand.u32 4294901760, %v10621_v20 }
 0x330   : > { %5794 = vmatpush1.msra.mxu1 %v5793_v58  ;;  %6025 = vmatpush1.msra.mxu0 %v5791_v11  ;;  %v10548_v41 = vand.u32 4294901760, %v6640_v55  ;;  %v6271_v60 = vand.u32 4294901760, %v6270_v51  ;;  %v7594_v11 = vsel %vm3220_vm13, %v7591_v48, %v7593_v56  ;;  %v7718_v14 = vsub.f32 %v7607_v0, %v10624_v7 }
 0x331   : > { %5943 = vmatprep.subr.mxu1 %v10465_v37  ;;  %6190 = vmatprep.subr.mxu0 %v10493_v24  ;;  %v7596_v15 = vmul.f32 %v10956_v9, %v7594_v11  ;;  %v7679_v19 = vsub.f32 %v10621_v20, %v7678_v29 }
 0x332   : > { %5827 = vmatprep.mubr.f32.mxu1 %v10952_v26  ;;  %6058 = vmatprep.mubr.f32.mxu0 %v10952_v26  ;;  %v6760_v21 = vsub.f32 %v6640_v55, %v10548_v41 }
 0x333   : > { %5829 = vmatmul.mubr.f32.vlgmr.msra.gmra.mxu1 %v10433_v52  ;;  %6060 = vmatmul.mubr.f32.vlgmr.msra.gmra.mxu0 %v10433_v52 }
 0x334   : > { %5945 = vmatpush1.msra.mxu1 %v10467_v36  ;;  %6192 = vmatpush1.msra.mxu0 %v10505_v59 }
 0x335   : > { %6097 = vmatprep.subr.mxu1 %v10465_v37  ;;  %6351 = vmatprep.subr.mxu0 %v6268_v49  ;;  %v6714_v37 = vand.u32 4294901760, %v10540_v1  ;;  %v7194_v49 = vand.u32 4294901760, %v7193_v44 }
 0x336   : > { %5978 = vmatprep.mubr.f32.mxu1 %v10952_v26  ;;  %6225 = vmatprep.mubr.f32.mxu0 %v10952_v26 }
 0x337   : > { %5982 = vmatmul.mubr.f32.vlgmr.msra.gmra.mxu1 %v5744_v31  ;;  %6231 = vmatmul.mubr.f32.vlgmr.msra.gmra.mxu0 %v6230_v63  ;;  %v6715_v31 = vsub.f32 %v10540_v1, %v6714_v37 }
 0x338   : > { %6099 = vmatpush1.msra.mxu1 %v10467_v36  ;;  %6354 = vmatpush1.msra.mxu0 %v6274_v25  ;;  %v6755_v36 = vand.u32 4294901760, %v6754_v5  ;;  %v9635_v25 = vld [vmem:[%s10887_s5 + $0x18] sm:$0xf] }
 0x339   : > { %6272 = vmatprep.subr.mxu1 %v6271_v60  ;;  %6505 = vmatprep.subr.mxu0 %v6269_v62  ;;  %v6716_v2 = vand.u32 4294901760, %v6715_v31  ;;  %v7235_v62 = vand.u32 4294901760, %v7234_v53 }
 0x33a   : > { %6132 = vmatprep.mubr.f32.mxu1 %v10952_v26  ;;  %6387 = vmatprep.mubr.f32.mxu0 %v10952_v26  ;;  %v6756_v6 = vsub.f32 %v6754_v5, %v6755_v36 }
 0x33b   : > { %6134 = vmatmul.mubr.f32.vlgmr.msra.gmra.mxu1 %v10433_v52  ;;  %6390 = vmatmul.mubr.f32.vlgmr.msra.gmra.mxu0 %v10490_v22  ;;  %v6761_v52 = vand.u32 4294901760, %v6760_v21 }
 0x33c   : > { %6278 = vmatpush1.msra.mxu1 %v6277_v23  ;;  %6509 = vmatpush1.msra.mxu0 %v6275_v38  ;;  %v6757_v4 = vand.u32 4294901760, %v6756_v6  ;;  %v10957_v38 = vld [vmem:[#allocation12_spill] sm:$0xff] }
 0x33d   : > { %6427 = vmatprep.subr.mxu1 %v10493_v24  ;;  %6676 = vmatprep.subr.mxu0 %v10535_v40  ;;  %v6762_v47 = vsub.f32 %v6760_v21, %v6761_v52 }
 0x33e   : > { %6311 = vmatprep.mubr.f32.mxu1 %v10952_v26  ;;  %6542 = vmatprep.mubr.f32.mxu0 %v10952_v26 }
 0x33f   : > { %6313 = vmatmul.mubr.f32.vlgmr.msra.gmra.mxu1 %v10479_v46  ;;  %6544 = vmatmul.mubr.f32.vlgmr.msra.gmra.mxu0 %v10479_v46  ;;  %v6763_v22 = vand.u32 4294901760, %v6762_v47 }
 0x340   : > { %6429 = vmatpush1.msra.mxu1 %v10505_v59  ;;  %6678 = vmatpush1.msra.mxu0 %v10548_v41 }
 0x341   : > { %6581 = vmatprep.subr.mxu1 %v10493_v24  ;;  %6837 = vmatprep.subr.mxu0 %v6754_v5  ;;  %v7238_v24 = vsub.f32 %v7118_v50, %v10593_v33 }
 0x342   : > { %6462 = vmatprep.mubr.f32.mxu1 %v10952_v26  ;;  %6711 = vmatprep.mubr.f32.mxu0 %v10952_v26 }
 0x343   : > { %6466 = vmatmul.mubr.f32.vlgmr.msra.gmra.mxu1 %v6228_v57  ;;  %6717 = vmatmul.mubr.f32.vlgmr.msra.gmra.mxu0 %v6716_v2  ;;  %v7604_v57 = vsel %vm325_vm1, %v7596_v15, 0 }
 0x344   : > { %6583 = vmatpush1.msra.mxu1 %v10505_v59  ;;  %6840 = vmatpush1.msra.mxu0 %v6760_v21  ;;  %v8079_v59 = vpop.permute.xlu1 %8078  ;;  %v10636_v58 = vand.u32 4294901760, %v7604_v57 }
 0x345   : > { %6758 = vmatprep.subr.mxu1 %v6757_v4  ;;  %6991 = vmatprep.subr.mxu0 %v6755_v36  ;;  %v8081_v12 = vsel %vm3707_vm2, %v8079_v59, %v8077_v30  ;;  %v8080_v63 = vsel %vm3707_vm2, %v8077_v30, %v8079_v59  ;;  %v8563_v36 = vpop.permute.xlu0 %8562  ;;  %v10695_v4 = vand.u32 4294901760, %v8573_v16  ;;  %v9637_v59 = vld [vmem:[%s10887_s5 + $0x20] sm:$0xf] }
 0x346   : > { %6616 = vmatprep.mubr.f32.mxu1 %v10952_v26  ;;  %6873 = vmatprep.mubr.f32.mxu0 %v10952_v26  ;;  %v8083_v55 = vmul.f32 %v10957_v38, %v8081_v12  ;;  %v7724_v51 = vsub.f32 %v7604_v57, %v10636_v58  ;;  %v8082_v42 = vmul.f32 %v10955_v18, %v8080_v63  ;;  %v7680_v18 = vand.u32 4294901760, %v7679_v19  ;;  %v10959_v12 = vld [vmem:[#allocation14_spill] sm:$0xff] }
 0x347   : > { %6618 = vmatmul.mubr.f32.vlgmr.msra.gmra.mxu1 %v10479_v46  ;;  %6876 = vmatmul.mubr.f32.vlgmr.msra.gmra.mxu0 %v10540_v1  ;;  %v7239_v46 = vand.u32 4294901760, %v7238_v24  ;;  %v10710_v34 = vsub.f32 %v8573_v16, %v10695_v4 }
 0x348   : > { %6764 = vmatpush1.msra.mxu1 %v6763_v22  ;;  %6995 = vmatpush1.msra.mxu0 %v6761_v52  ;;  %v8093_v5 = vsel %vm325_vm1, %v8083_v55, 0  ;;  %v8090_v10 = vsel %vm325_vm1, %v8082_v42, 0 }
 0x349   : > { %6913 = vmatprep.subr.mxu1 %v10535_v40  ;;  %7154 = vmatprep.subr.mxu0 %v10578_v54  ;;  %v7240_v61 = vsub.f32 %v7238_v24, %v7239_v46  ;;  %v10666_v21 = vand.u32 4294901760, %v8093_v5  ;;  %v10681_v52 = vand.u32 4294901760, %v8090_v10 }
 0x34a   : > { %6797 = vmatprep.mubr.f32.mxu1 %v10952_v26  ;;  %7028 = vmatprep.mubr.f32.mxu0 %v10952_v26 }
 0x34b   : > { %6799 = vmatmul.mubr.f32.vlgmr.msra.gmra.mxu1 %v10527_v27  ;;  %7030 = vmatmul.mubr.f32.vlgmr.msra.gmra.mxu0 %v10527_v27  ;;  %v7241_v1 = vand.u32 4294901760, %v7240_v61  ;;  %v8204_v6 = vsub.f32 %v8093_v5, %v10666_v21  ;;  %v8210_v47 = vsub.f32 %v8090_v10, %v10681_v52  ;;  %v9059_v61 = vsel %vm321_vm0, %v9637_v59, 0 }
 0x34c   : > { %6915 = vmatpush1.msra.mxu1 %v10548_v41  ;;  %7156 = vmatpush1.msra.mxu0 %v10593_v33 }
 0x34d   : > { %7067 = vmatprep.subr.mxu1 %v10535_v40  ;;  %7315 = vmatprep.subr.mxu0 %v7232_v45  ;;  %v8087_v40 = vsel %vm321_vm0, %v9635_v25, 0  ;;  %v8205_v45 = vand.u32 4294901760, %v8204_v6 }
 0x34e   : > { %6948 = vmatprep.mubr.f32.mxu1 %v10952_v26  ;;  %7189 = vmatprep.mubr.f32.mxu0 %v10952_v26  ;;  %v10658_v60 = vand.u32 4294901760, %v8087_v40 }
 0x34f   : > { %6952 = vmatmul.mubr.f32.vlgmr.msra.gmra.mxu1 %v6714_v37  ;;  %7195 = vmatmul.mubr.f32.vlgmr.msra.gmra.mxu0 %v7194_v49  ;;  %v8565_v37 = vpop.permute.xlu1 %8564  ;;  %v8206_v44 = vsub.f32 %v8204_v6, %v8205_v45  ;;  %v8650_v49 = vand.u32 4294901760, %v10710_v34 }
 0x350   : > { %7069 = vmatpush1.msra.mxu1 %v10548_v41  ;;  %7318 = vmatpush1.msra.mxu0 %v7238_v24  ;;  %v7719_v41 = vand.u32 4294901760, %v7718_v14  ;;  %v10671_v31 = vsub.f32 %v8087_v40, %v10658_v60  ;;  %v8567_v56 = vsel %vm4194_vm3, %v8565_v37, %v8563_v36 }
 0x351   : > { %7236 = vmatprep.subr.mxu1 %v7235_v62  ;;  %7469 = vmatprep.subr.mxu0 %v7233_v39  ;;  %v9049_v39 = vpop.permute.xlu0 %9048  ;;  %v8207_v53 = vand.u32 4294901760, %v8206_v44  ;;  %v8651_v35 = vsub.f32 %v10710_v34, %v8650_v49 }
 0x352   : > { %7102 = vmatprep.mubr.f32.mxu1 %v10952_v26  ;;  %7351 = vmatprep.mubr.f32.mxu0 %v10952_v26  ;;  %v7720_v23 = vsub.f32 %v7718_v14, %v7719_v41  ;;  %v8164_v48 = vand.u32 4294901760, %v10671_v31 }
 0x353   : > { %7104 = vmatmul.mubr.f32.vlgmr.msra.gmra.mxu1 %v10527_v27  ;;  %7354 = vmatmul.mubr.f32.vlgmr.msra.gmra.mxu0 %v10581_v28  ;;  %v7725_v27 = vand.u32 4294901760, %v7724_v51  ;;  %v9051_v11 = vpop.permute.xlu1 %9050 }
 0x354   : > { %7242 = vmatpush1.msra.mxu1 %v7241_v1  ;;  %7473 = vmatpush1.msra.mxu0 %v7239_v46  ;;  %v7721_v2 = vand.u32 4294901760, %v7720_v23  ;;  %v9053_v0 = vsel %vm4681_vm6, %v9051_v11, %v9049_v39  ;;  %v9052_v30 = vsel %vm4681_vm6, %v9049_v39, %v9051_v11 }
 0x355   : > { %7391 = vmatprep.subr.mxu1 %v10578_v54  ;;  %7640 = vmatprep.subr.mxu0 %v10624_v7  ;;  %v7726_v50 = vsub.f32 %v7724_v51, %v7725_v27  ;;  %v9055_v25 = vmul.f32 %v10959_v12, %v9053_v0 }
 0x356   : > { %7275 = vmatprep.mubr.f32.mxu1 %v10952_v26  ;;  %7506 = vmatprep.mubr.f32.mxu0 %v10952_v26 }
 0x357   : > { %7277 = vmatmul.mubr.f32.vlgmr.msra.gmra.mxu1 %v10566_v3  ;;  %7508 = vmatmul.mubr.f32.vlgmr.msra.gmra.mxu0 %v10566_v3  ;;  %v7727_v28 = vand.u32 4294901760, %v7726_v50  ;;  %v9065_v63 = vsel %vm325_vm1, %v9055_v25, 0 }
 0x358   : > { %7393 = vmatpush1.msra.mxu1 %v10593_v33  ;;  %7642 = vmatpush1.msra.mxu0 %v10636_v58  ;;  %v10755_v55 = vand.u32 4294901760, %v9065_v63 }
 0x359   : > { %7545 = vmatprep.subr.mxu1 %v10578_v54  ;;  %7801 = vmatprep.subr.mxu0 %v7718_v14  ;;  %v10958_v54 = vld [vmem:[#allocation13_spill] sm:$0xff]  ;;  %v10747_v14 = vand.u32 4294901760, %v9059_v61 }
 0x35a   : > { %7426 = vmatprep.mubr.f32.mxu1 %v10952_v26  ;;  %7675 = vmatprep.mubr.f32.mxu0 %v10952_v26  ;;  %v8569_v17 = vmul.f32 %v10958_v54, %v8567_v56 }
 0x35b   : > { %7430 = vmatmul.mubr.f32.vlgmr.msra.gmra.mxu1 %v7192_v8  ;;  %7681 = vmatmul.mubr.f32.vlgmr.msra.gmra.mxu0 %v7680_v18  ;;  %v8566_v8 = vsel %vm4194_vm3, %v8563_v36, %v8565_v37 }
 0x35c   : > { %7547 = vmatpush1.msra.mxu1 %v10593_v33  ;;  %7804 = vmatpush1.msra.mxu0 %v7724_v51  ;;  %v8165_v33 = vsub.f32 %v10671_v31, %v8164_v48  ;;  %v8579_v43 = vsel %vm325_vm1, %v8569_v17, 0  ;;  %v8576_v22 = vsel %vm325_vm1, %v8566_v8, 0  ;;  %v10760_v51 = vsub.f32 %v9059_v61, %v10747_v14 }
 0x35d   : > { %7722 = vmatprep.subr.mxu1 %v7721_v2  ;;  %7955 = vmatprep.subr.mxu0 %v7719_v41  ;;  %v10713_v24 = vand.u32 4294901760, %v8579_v43  ;;  %v10725_v46 = vand.u32 4294901760, %v8576_v22  ;;  %v9176_v41 = vsub.f32 %v9065_v63, %v10755_v55 }
 0x35e   : > { %7580 = vmatprep.mubr.f32.mxu1 %v10952_v26  ;;  %7837 = vmatprep.mubr.f32.mxu0 %v10952_v26  ;;  %v8166_v15 = vand.u32 4294901760, %v8165_v33  ;;  %v9136_v5 = vand.u32 4294901760, %v10760_v51 }
 0x35f   : > { %7582 = vmatmul.mubr.f32.vlgmr.msra.gmra.mxu1 %v10566_v3  ;;  %7840 = vmatmul.mubr.f32.vlgmr.msra.gmra.mxu0 %v10621_v20  ;;  %v8211_v3 = vand.u32 4294901760, %v8210_v47  ;;  %v8696_v62 = vsub.f32 %v8576_v22, %v10725_v46  ;;  %v9177_v10 = vand.u32 4294901760, %v9176_v41 }
 0x360   : > { %7728 = vmatpush1.msra.mxu1 %v7727_v28  ;;  %7959 = vmatpush1.msra.mxu0 %v7725_v27  ;;  %v9137_v27 = vsub.f32 %v10760_v51, %v9136_v5 }
 0x361   : > { %7877 = vmatprep.subr.mxu1 %v10624_v7  ;;  %8126 = vmatprep.subr.mxu0 %v10666_v21  ;;  %v8212_v57 = vsub.f32 %v8210_v47, %v8211_v3  ;;  %v8697_v38 = vand.u32 4294901760, %v8696_v62  ;;  %v9178_v23 = vsub.f32 %v9176_v41, %v9177_v10 }
 0x362   : > { %7761 = vmatprep.mubr.f32.mxu1 %v10952_v26  ;;  %7992 = vmatprep.mubr.f32.mxu0 %v10952_v26 }
 0x363   : > { %7763 = vmatmul.mubr.f32.vlgmr.msra.gmra.mxu1 %v10607_v13  ;;  %7994 = vmatmul.mubr.f32.vlgmr.msra.gmra.mxu0 %v10607_v13  ;;  %v8213_v20 = vand.u32 4294901760, %v8212_v57  ;;  %v8698_v19 = vsub.f32 %v8696_v62, %v8697_v38  ;;  %v9179_v36 = vand.u32 4294901760, %v9178_v23 }
 0x364   : > { %7879 = vmatpush1.msra.mxu1 %v10636_v58  ;;  %8128 = vmatpush1.msra.mxu0 %v10681_v52 }
 0x365   : > { %8031 = vmatprep.subr.mxu1 %v10624_v7  ;;  %8287 = vmatprep.subr.mxu0 %v8204_v6  ;;  %v8690_v7 = vsub.f32 %v8579_v43, %v10713_v24  ;;  %v8699_v18 = vand.u32 4294901760, %v8698_v19 }
 0x366   : > { %7912 = vmatprep.mubr.f32.mxu1 %v10952_v26  ;;  %8161 = vmatprep.mubr.f32.mxu0 %v10952_v26 }
 0x367   : > { %7916 = vmatmul.mubr.f32.vlgmr.msra.gmra.mxu1 %v7678_v29  ;;  %8167 = vmatmul.mubr.f32.vlgmr.msra.gmra.mxu0 %v8166_v15  ;;  %v9054_v29 = vmul.f32 %v10956_v9, %v9052_v30  ;;  %v8652_v9 = vand.u32 4294901760, %v8651_v35 }
 0x368   : > { %8033 = vmatpush1.msra.mxu1 %v10636_v58  ;;  %8290 = vmatpush1.msra.mxu0 %v8210_v47  ;;  %v8691_v58 = vand.u32 4294901760, %v8690_v7 }
 0x369   : > { %8208 = vmatprep.subr.mxu1 %v8207_v53  ;;  %8441 = vmatprep.subr.mxu0 %v8205_v45 }
 0x36a   : > { %8066 = vmatprep.mubr.f32.mxu1 %v10952_v26  ;;  %8323 = vmatprep.mubr.f32.mxu0 %v10952_v26  ;;  %v8692_v40 = vsub.f32 %v8690_v7, %v8691_v58 }
 0x36b   : > { %8068 = vmatmul.mubr.f32.vlgmr.msra.gmra.mxu1 %v10607_v13  ;;  %8326 = vmatmul.mubr.f32.vlgmr.msra.gmra.mxu0 %v10671_v31  ;;  %v9062_v13 = vsel %vm325_vm1, %v9054_v29, 0 }
 0x36c   : > { %8214 = vmatpush1.msra.mxu1 %v8213_v20  ;;  %8445 = vmatpush1.msra.mxu0 %v8211_v3  ;;  %v9099_v1 = vand.u32 4294901760, %v9062_v13  ;;  %v8693_v42 = vand.u32 4294901760, %v8692_v40 }
 0x36d   : > { %8363 = vmatprep.subr.mxu1 %v10666_v21  ;;  %8612 = vmatprep.subr.mxu0 %v10713_v24 }
 0x36e   : > { %8247 = vmatprep.mubr.f32.mxu1 %v10952_v26  ;;  %8478 = vmatprep.mubr.f32.mxu0 %v10952_v26  ;;  %v9182_v37 = vsub.f32 %v9062_v13, %v9099_v1 }
 0x36f   : > { %8249 = vmatmul.mubr.f32.vlgmr.msra.gmra.mxu1 %v10658_v60  ;;  %8480 = vmatmul.mubr.f32.vlgmr.msra.gmra.mxu0 %v10658_v60 }
 0x370   : > { %8365 = vmatpush1.msra.mxu1 %v10681_v52  ;;  %8614 = vmatpush1.msra.mxu0 %v10725_v46 }
 0x371   : > { %8517 = vmatprep.subr.mxu1 %v10666_v21  ;;  %8773 = vmatprep.subr.mxu0 %v8690_v7  ;;  %v9183_v21 = vand.u32 4294901760, %v9182_v37 }
 0x372   : > { %8398 = vmatprep.mubr.f32.mxu1 %v10952_v26  ;;  %8647 = vmatprep.mubr.f32.mxu0 %v10952_v26 }
 0x373   : > { %8402 = vmatmul.mubr.f32.vlgmr.msra.gmra.mxu1 %v8164_v48  ;;  %8653 = vmatmul.mubr.f32.vlgmr.msra.gmra.mxu0 %v8652_v9  ;;  %v9184_v31 = vsub.f32 %v9182_v37, %v9183_v21 }
 0x374   : > { %8519 = vmatpush1.msra.mxu1 %v10681_v52  ;;  %8776 = vmatpush1.msra.mxu0 %v8696_v62 }
 0x375   : > { %8694 = vmatprep.subr.mxu1 %v8693_v42  ;;  %8927 = vmatprep.subr.mxu0 %v8691_v58  ;;  %v9185_v32 = vand.u32 4294901760, %v9184_v31 }
 0x376   : > { %8552 = vmatprep.mubr.f32.mxu1 %v10952_v26  ;;  %8809 = vmatprep.mubr.f32.mxu0 %v10952_v26 }
 0x377   : > { %8554 = vmatmul.mubr.f32.vlgmr.msra.gmra.mxu1 %v10658_v60  ;;  %8812 = vmatmul.mubr.f32.vlgmr.msra.gmra.mxu0 %v10710_v34  ;;  %v9138_v60 = vand.u32 4294901760, %v9137_v27 }
 0x378   : > { %8700 = vmatpush1.msra.mxu1 %v8699_v18  ;;  %8931 = vmatpush1.msra.mxu0 %v8697_v38 }
 0x379   : > { %8849 = vmatprep.subr.mxu1 %v10713_v24  ;;  %9098 = vmatprep.subr.mxu0 %v10755_v55 }
 0x37a   : > { %8733 = vmatprep.mubr.f32.mxu1 %v10952_v26  ;;  %8964 = vmatprep.mubr.f32.mxu0 %v10952_v26 }
 0x37b   : > { %8735 = vmatmul.mubr.f32.vlgmr.msra.gmra.mxu1 %v10695_v4  ;;  %8966 = vmatmul.mubr.f32.vlgmr.msra.gmra.mxu0 %v10695_v4 }
 0x37c   : > { %8851 = vmatpush1.msra.mxu1 %v10725_v46  ;;  %9100 = vmatpush1.msra.mxu0 %v9099_v1 }
 0x37d   : > { %9003 = vmatprep.subr.mxu1 %v10713_v24  ;;  %9259 = vmatprep.subr.mxu0 %v9176_v41 }
 0x37e   : > { %8884 = vmatprep.mubr.f32.mxu1 %v10952_v26  ;;  %9133 = vmatprep.mubr.f32.mxu0 %v10952_v26 }
 0x37f   : > { %8888 = vmatmul.mubr.f32.vlgmr.msra.gmra.mxu1 %v8650_v49  ;;  %9139 = vmatmul.mubr.f32.vlgmr.msra.gmra.mxu0 %v9138_v60 }
 0x380   : > { %9005 = vmatpush1.msra.mxu1 %v10725_v46  ;;  %9262 = vmatpush1.msra.mxu0 %v9182_v37 }
 0x381   : > { %9180 = vmatprep.subr.mxu1 %v9179_v36  ;;  %9413 = vmatprep.subr.mxu0 %v9177_v10 }
 0x382   : > { %9038 = vmatprep.mubr.f32.mxu1 %v10952_v26  ;;  %9295 = vmatprep.mubr.f32.mxu0 %v10952_v26 }
 0x383   : > { %9040 = vmatmul.mubr.f32.vlgmr.msra.gmra.mxu1 %v10695_v4  ;;  %9298 = vmatmul.mubr.f32.vlgmr.msra.gmra.mxu0 %v10760_v51 }
 0x384   : > { %9186 = vmatpush1.msra.mxu1 %v9185_v32  ;;  %9417 = vmatpush1.msra.mxu0 %v9183_v21 }
 0x385   : > { %9335 = vmatprep.subr.mxu1 %v10755_v55  ;;  %9219 = vmatprep.mubr.f32.mxu1 %v10952_v26 }
 0x386   : > { %9450 = vmatprep.mubr.f32.mxu0 %v10952_v26 }
 0x387   : > { %9221 = vmatmul.mubr.f32.vlgmr.msra.gmra.mxu1 %v10747_v14  ;;  %9452 = vmatmul.mubr.f32.vlgmr.msra.gmra.mxu0 %v10747_v14 }
 0x388   : > { %9337 = vmatpush1.msra.mxu1 %v9099_v1  ;;  %9370 = vmatprep.mubr.f32.mxu1 %v10952_v26 }
 0x389   : > { %9489 = vmatprep.subr.mxu1 %v10755_v55 }
 0x38b   : > { %9374 = vmatmul.mubr.f32.vlgmr.msra.gmra.mxu1 %v9136_v5 }
 0x38c   : > { %9491 = vmatpush1.msra.mxu1 %v9099_v1  ;;  %9524 = vmatprep.mubr.f32.mxu1 %v10952_v26 }
 0x38f   : > { %9526 = vmatmul.mubr.f32.vlgmr.msra.gmra.mxu1 %v10747_v14 }
 0x3de   : > { %v5274_v56 = vpop.f32.mrf.mxu0 }
 0x3e0   : > { %v5276_v52 = vpop.f32.mrf.mxu0 }
 0x3e2   : > { %v5433_v50 = vpop.f32.mrf.mxu0 }
 0x3e4   : > { %v5435_v2 = vpop.f32.mrf.mxu0 }
 0x3e6   : > { %v5587_v6 = vpop.f32.mrf.mxu0 }
 0x3e7   : > { %v5356_v48 = vpop.f32.mrf.mxu1 }
 0x3e8   : > { %v5357_v16 = vadd.f32 %v5356_v48, %v5274_v56  ;;  %v5589_v54 = vpop.f32.mrf.mxu0 }
 0x3e9   : > { %v5358_v17 = vpop.f32.mrf.mxu1 }
 0x3ea   : > { %v5359_v47 = vadd.f32 %v5358_v17, %v5276_v52  ;;  %v5434_v28 = vadd.f32 %v5433_v50, %v5357_v16 }
 0x3eb   : > { %v5509_v4 = vpop.f32.mrf.mxu1  ;;  %v5748_v33 = vpop.f32.mrf.mxu0 }
 0x3ec   : > { %v5436_v45 = vadd.f32 %v5435_v2, %v5359_v47  ;;  %v5510_v8 = vadd.f32 %v5509_v4, %v5434_v28 }
 0x3ed   : > { %v5511_v43 = vpop.f32.mrf.mxu1  ;;  %v5750_v11 = vpop.f32.mrf.mxu0 }
 0x3ee   : > { %v5512_v26 = vadd.f32 %v5511_v43, %v5436_v45  ;;  %v5588_v3 = vadd.f32 %v5587_v6, %v5510_v8 }
 0x3ef   : > { %v5661_v34 = vpop.f32.mrf.mxu1  ;;  %v5907_v22 = vpop.f32.mrf.mxu0 }
 0x3f0   : > { %v5590_v24 = vadd.f32 %v5589_v54, %v5512_v26  ;;  %v5662_v15 = vadd.f32 %v5661_v34, %v5588_v3 }
 0x3f1   : > { %v5663_v44 = vpop.f32.mrf.mxu1  ;;  %v5909_v39 = vpop.f32.mrf.mxu0 }
 0x3f2   : > { %v5664_v0 = vadd.f32 %v5663_v44, %v5590_v24  ;;  %v5749_v59 = vadd.f32 %v5748_v33, %v5662_v15 }
 0x3f3   : > { %v5830_v46 = vpop.f32.mrf.mxu1  ;;  %v6061_v57 = vpop.f32.mrf.mxu0 }
 0x3f4   : > { %v5751_v49 = vadd.f32 %v5750_v11, %v5664_v0  ;;  %v5831_v53 = vadd.f32 %v5830_v46, %v5749_v59 }
 0x3f5   : > { %v5832_v7 = vpop.f32.mrf.mxu1  ;;  %v6063_v30 = vpop.f32.mrf.mxu0 }
 0x3f6   : > { %v5833_v12 = vadd.f32 %v5832_v7, %v5751_v49  ;;  %v5908_v25 = vadd.f32 %v5907_v22, %v5831_v53 }
 0x3f7   : > { %v5983_v61 = vpop.f32.mrf.mxu1  ;;  %v6232_v62 = vpop.f32.mrf.mxu0 }
 0x3f8   : > { %v5910_v20 = vadd.f32 %v5909_v39, %v5833_v12  ;;  %v5984_v35 = vadd.f32 %v5983_v61, %v5908_v25 }
 0x3f9   : > { %v5985_v29 = vpop.f32.mrf.mxu1  ;;  %v10803_v58 = vpop.f32.mrf.mxu0 }
 0x3fa   : > { %v5986_v14 = vadd.f32 %v5985_v29, %v5910_v20  ;;  %v6062_v63 = vadd.f32 %v6061_v57, %v5984_v35 }
 0x3fb   : > { %v6135_v38 = vpop.f32.mrf.mxu1  ;;  %v6391_v9 = vpop.f32.mrf.mxu0 }
 0x3fc   : > { %v6064_v13 = vadd.f32 %v6063_v30, %v5986_v14  ;;  %v6136_v55 = vadd.f32 %v6135_v38, %v6062_v63 }
 0x3fd   : > { %v6137_v40 = vpop.f32.mrf.mxu1  ;;  %v10805_v51 = vpop.f32.mrf.mxu0 }
 0x3fe   : > { %v10807_v1 = vadd.f32 %v6137_v40, %v6064_v13 }
 0x3ff   : > { %v6314_v19 = vpop.f32.mrf.mxu1  ;;  %v6545_v42 = vpop.f32.mrf.mxu0 }
 0x400   : > { %10960 = vst [vmem:[#allocation16_spill] sm:$0xff] %v10807_v1  ;;  %v6315_v41 = vadd.f32 %v6314_v19, %v6232_v62 }
 0x401   : > { %v6316_v5 = vpop.f32.mrf.mxu1  ;;  %v10809_v37 = vpop.f32.mrf.mxu0 }
 0x402   : > { %v6392_v18 = vadd.f32 %v6391_v9, %v6315_v41  ;;  %v6317_v13 = vadd.f32 %v6316_v5, %v10803_v58 }
 0x403   : > { %v6467_v27 = vpop.f32.mrf.mxu1  ;;  %v6718_v10 = vpop.f32.mrf.mxu0 }
 0x404   : > { %v6468_v21 = vadd.f32 %v6467_v27, %v6392_v18 }
 0x405   : > { %v10811_v60 = vpop.f32.mrf.mxu1  ;;  %v6720_v23 = vpop.f32.mrf.mxu0 }
 0x406   : > { %v6546_v31 = vadd.f32 %v6545_v42, %v6468_v21  ;;  %v6394_v21 = vadd.f32 %v10805_v51, %v6317_v13 }
 0x407   : > { %v6619_v36 = vpop.f32.mrf.mxu1  ;;  %v6877_v32 = vpop.f32.mrf.mxu0 }
 0x408   : > { %v6620_v56 = vadd.f32 %v6619_v36, %v6546_v31 }
 0x409   : > { %v10813_v52 = vpop.f32.mrf.mxu1  ;;  %v6879_v50 = vpop.f32.mrf.mxu0 }
 0x40a   : > { %v10815_v2 = vadd.f32 %v6620_v56, %v6136_v55 }
 0x40b   : > { %v6800_v6 = vpop.f32.mrf.mxu1  ;;  %v10817_v48 = vpop.f32.mrf.mxu0 }
 0x40c   : > { %10961 = vst [vmem:[#allocation17_spill] sm:$0xff] %v10815_v2  ;;  %v6801_v55 = vadd.f32 %v6800_v6, %v6718_v10  ;;  %v6470_v10 = vadd.f32 %v10811_v60, %v6394_v21 }
 0x40d   : > { %v6802_v16 = vpop.f32.mrf.mxu1  ;;  %v10819_v54 = vpop.f32.mrf.mxu0 }
 0x40e   : > { %v6803_v42 = vadd.f32 %v6802_v16, %v6720_v23  ;;  %v6878_v31 = vadd.f32 %v6877_v32, %v6801_v55 }
 0x40f   : > { %v6953_v17 = vpop.f32.mrf.mxu1  ;;  %v7196_v47 = vpop.f32.mrf.mxu0 }
 0x410   : > { %v6954_v23 = vadd.f32 %v6953_v17, %v6878_v31 }
 0x411   : > { %v6955_v28 = vpop.f32.mrf.mxu1  ;;  %v7198_v4 = vpop.f32.mrf.mxu0 }
 0x413   : > { %v10821_v33 = vpop.f32.mrf.mxu1  ;;  %v7355_v45 = vpop.f32.mrf.mxu0 }
 0x415   : > { %v10823_v8 = vpop.f32.mrf.mxu1  ;;  %v7357_v43 = vpop.f32.mrf.mxu0 }
 0x417   : > { %v7278_v11 = vpop.f32.mrf.mxu1  ;;  %v10825_v26 = vpop.f32.mrf.mxu0 }
 0x418   : > { %v7279_v41 = vadd.f32 %v7278_v11, %v7196_v47 }
 0x419   : > { %v7280_v3 = vpop.f32.mrf.mxu1  ;;  %v10827_v34 = vpop.f32.mrf.mxu0 }
 0x41a   : > { %v7281_v36 = vadd.f32 %v7280_v3, %v7198_v4  ;;  %v7356_v2 = vadd.f32 %v7355_v45, %v7279_v41 }
 0x41b   : > { %v7431_v22 = vpop.f32.mrf.mxu1  ;;  %v7682_v24 = vpop.f32.mrf.mxu0 }
 0x41c   : > { %v7358_v6 = vadd.f32 %v7357_v43, %v7281_v36  ;;  %v7432_v3 = vadd.f32 %v7431_v22, %v7356_v2 }
 0x41d   : > { %v7433_v15 = vpop.f32.mrf.mxu1  ;;  %v7684_v44 = vpop.f32.mrf.mxu0 }
 0x41f   : > { %v10829_v39 = vpop.f32.mrf.mxu1  ;;  %v7841_v0 = vpop.f32.mrf.mxu0 }
 0x421   : > { %v10831_v59 = vpop.f32.mrf.mxu1  ;;  %v7843_v46 = vpop.f32.mrf.mxu0 }
 0x422   : > { %10962 = vst [vmem:[#allocation19_spill] sm:$0xff] %v10831_v59  ;;  %v6880_v59 = vadd.f32 %v6879_v50, %v6803_v42  ;;  %v10967_v42 = vld [vmem:[#allocation17_spill] sm:$0xff] }
 0x423   : > { %v7764_v57 = vpop.f32.mrf.mxu1  ;;  %v10833_v49 = vpop.f32.mrf.mxu0 }
 0x424   : > { %v7765_v56 = vadd.f32 %v7764_v57, %v7682_v24  ;;  %v6956_v11 = vadd.f32 %v6955_v28, %v6880_v59  ;;  %v7510_v28 = vadd.f32 %v10825_v26, %v7432_v3 }
 0x425   : > { %v7766_v53 = vpop.f32.mrf.mxu1  ;;  %v10835_v7 = vpop.f32.mrf.mxu0 }
 0x426   : > { %v7842_v16 = vadd.f32 %v7841_v0, %v7765_v56  ;;  %v7584_v26 = vadd.f32 %v10829_v39, %v7510_v28 }
 0x427   : > { %v7917_v30 = vpop.f32.mrf.mxu1  ;;  %v8168_v12 = vpop.f32.mrf.mxu0 }
 0x428   : > { %v7918_v60 = vadd.f32 %v7917_v30, %v7842_v16 }
 0x429   : > { %v7919_v25 = vpop.f32.mrf.mxu1  ;;  %v8170_v61 = vpop.f32.mrf.mxu0  ;;  %v10968_v41 = vld [vmem:[#allocation19_spill] sm:$0xff] }
 0x42b   : > { %v10837_v62 = vpop.f32.mrf.mxu1  ;;  %v8327_v20 = vpop.f32.mrf.mxu0 }
 0x42c   : > { %10963 = vst [vmem:[#allocation22_spill] sm:$0xff] %v10837_v62 }
 0x42d   : > { %v10839_v35 = vpop.f32.mrf.mxu1  ;;  %v8329_v29 = vpop.f32.mrf.mxu0 }
 0x42e   : > { %10964 = vst [vmem:[#allocation15_spill] sm:$0xff] %v10839_v35 }
 0x42f   : > { %v8250_v14 = vpop.f32.mrf.mxu1  ;;  %v10841_v63 = vpop.f32.mrf.mxu0 }
 0x430   : > { %v8251_v5 = vadd.f32 %v8250_v14, %v8168_v12  ;;  %v7032_v12 = vadd.f32 %v10817_v48, %v6954_v23  ;;  %v7434_v14 = vadd.f32 %v7433_v15, %v7358_v6  ;;  %v7996_v15 = vadd.f32 %v10833_v49, %v7918_v60 }
 0x431   : > { %v8252_v38 = vpop.f32.mrf.mxu1  ;;  %v10843_v9 = vpop.f32.mrf.mxu0 }
 0x432   : > { %10965 = vst [vmem:[#allocation18_spill] sm:$0xff] %v10843_v9  ;;  %v7767_v9 = vadd.f32 %v7766_v53, %v7684_v44  ;;  %v8253_v32 = vadd.f32 %v8252_v38, %v8170_v61  ;;  %v8328_v45 = vadd.f32 %v8327_v20, %v8251_v5  ;;  %v6548_v53 = vadd.f32 %v10809_v37, %v6470_v10 }
 0x433   : > { %v8403_v40 = vpop.f32.mrf.mxu1  ;;  %v8654_v19 = vpop.f32.mrf.mxu0  ;;  %v7034_v61 = vadd.f32 %v10819_v54, %v6956_v11  ;;  %v7106_v37 = vadd.f32 %v10821_v33, %v7032_v12  ;;  %v7512_v48 = vadd.f32 %v10827_v34, %v7434_v14 }
 0x434   : > { %v7844_v24 = vadd.f32 %v7843_v46, %v7767_v9  ;;  %v8330_v0 = vadd.f32 %v8329_v29, %v8253_v32  ;;  %v8404_v46 = vadd.f32 %v8403_v40, %v8328_v45  ;;  %v6622_v38 = vadd.f32 %v10813_v52, %v6548_v53 }
 0x435   : > { %v8405_v18 = vpop.f32.mrf.mxu1  ;;  %v8656_v27 = vpop.f32.mrf.mxu0  ;;  %v7108_v54 = vadd.f32 %v10823_v8, %v7034_v61  ;;  %v7110_v34 = vadd.f32 %v7106_v37, %v10967_v42  ;;  %v7586_v49 = vadd.f32 %v10968_v41, %v7512_v48  ;;  %v10971_v5 = vld [vmem:[#allocation15_spill] sm:$0xff] }
 0x436   : > { %v7920_v2 = vadd.f32 %v7919_v25, %v7844_v24  ;;  %v8482_v40 = vadd.f32 %v10841_v63, %v8404_v46 }
 0x437   : > { %v10847_v35 = vpop.f32.mrf.mxu1  ;;  %v8813_v62 = vpop.f32.mrf.mxu0 }
 0x438   : > { %v7998_v25 = vadd.f32 %v10835_v7, %v7920_v2  ;;  %v7588_v7 = vadd.f32 %v7584_v26, %v7110_v34  ;;  %v8556_v23 = vadd.f32 %v10847_v35, %v8482_v40 }
 0x439   : > { %v10849_v1 = vpop.f32.mrf.mxu1  ;;  %v8815_v58 = vpop.f32.mrf.mxu0  ;;  %v10970_v36 = vld [vmem:[#allocation18_spill] sm:$0xff] }
 0x43a   : > { %v8072_v10 = vadd.f32 %v10971_v5, %v7998_v25 }
 0x43b   : > { %v8736_v47 = vpop.f32.mrf.mxu1  ;;  %v8967_v51 = vpop.f32.mrf.mxu0 }
 0x43c   : > { %v8737_v4 = vadd.f32 %v8736_v47, %v8654_v19  ;;  %v10966_v19 = vld [vmem:[#allocation16_spill] sm:$0xff] }
 0x43d   : > { %v8738_v57 = vpop.f32.mrf.mxu1  ;;  %v8969_v50 = vpop.f32.mrf.mxu0  ;;  %v6625_v33 = vadd.f32 %v6622_v38, %v10966_v19  ;;  %v10973_v38 = vld [vmem:[#allocation3_spill] sm:$0xff] }
 0x43e   : > { %v8739_v44 = vadd.f32 %v8738_v57, %v8656_v27  ;;  %v8814_v13 = vadd.f32 %v8813_v62, %v8737_v4  ;;  %v8406_v62 = vadd.f32 %v8405_v18, %v8330_v0  ;;  %v10969_v27 = vld [vmem:[#allocation22_spill] sm:$0xff] }
 0x43f   : > { %v8889_v17 = vpop.f32.mrf.mxu1  ;;  %v9140_v43 = vpop.f32.mrf.mxu0  ;;  %v8070_v21 = vadd.f32 %v10969_v27, %v7996_v15 }
 0x440   : > { %v8816_v20 = vadd.f32 %v8815_v58, %v8739_v44  ;;  %v8890_v9 = vadd.f32 %v8889_v17, %v8814_v13  ;;  %v8484_v8 = vadd.f32 %v10970_v36, %v8406_v62  ;;  %v7111_v58 = vadd.f32 %v7108_v54, %v6625_v33 }
 0x441   : > { %v8891_v22 = vpop.f32.mrf.mxu1  ;;  %v9142_v59 = vpop.f32.mrf.mxu0  ;;  %v8074_v4 = vadd.f32 %v8070_v21, %v7588_v7 }
 0x442   : > { %v8892_v52 = vadd.f32 %v8891_v22, %v8816_v20  ;;  %v8968_v56 = vadd.f32 %v8967_v51, %v8890_v9  ;;  %v7589_v32 = vadd.f32 %v7586_v49, %v7111_v58  ;;  %v8558_v24 = vadd.f32 %v10849_v1, %v8484_v8 }
 0x443   : > { %v9041_v30 = vpop.f32.mrf.mxu1  ;;  %v9299_v29 = vpop.f32.mrf.mxu0  ;;  %v8560_v12 = vadd.f32 %v8556_v23, %v8074_v4 }
 0x444   : > { %v8970_v6 = vadd.f32 %v8969_v50, %v8892_v52  ;;  %v9042_v57 = vadd.f32 %v9041_v30, %v8968_v56  ;;  %v8075_v44 = vadd.f32 %v8072_v10, %v7589_v32 }
 0x445   : > { %v9043_v55 = vpop.f32.mrf.mxu1  ;;  %v9301_v31 = vpop.f32.mrf.mxu0 }
 0x446   : > { %v9044_v14 = vadd.f32 %v9043_v55, %v8970_v6  ;;  %v9046_v0 = vadd.f32 %v9042_v57, %v8560_v12 }
 0x447   : > { %v9222_v18 = vpop.f32.mrf.mxu1  ;;  %v9453_v3 = vpop.f32.mrf.mxu0 }
 0x448   : > { %v9223_v39 = vadd.f32 %v9222_v18, %v9140_v43  ;;  %v8561_v43 = vadd.f32 %v8558_v24, %v8075_v44 }
 0x449   : > { %v9224_v63 = vpop.f32.mrf.mxu1  ;;  %v9455_v35 = vpop.f32.mrf.mxu0 }
 0x44a   : > { %v9225_v16 = vadd.f32 %v9224_v63, %v9142_v59  ;;  %v9300_v47 = vadd.f32 %v9299_v29, %v9223_v39  ;;  %v9047_v2 = vadd.f32 %v9044_v14, %v8561_v43  ;;  %v10972_v59 = vld [vmem:[#allocation2_spill] sm:$0xff] }
 0x44b   : > { %v9375_v11 = vpop.f32.mrf.mxu1 }
 0x44c   : > { %v9302_v45 = vadd.f32 %v9301_v31, %v9225_v16  ;;  %v9376_v51 = vadd.f32 %v9375_v11, %v9300_v47 }
 0x44d   : > { %v9377_v53 = vpop.f32.mrf.mxu1 }
 0x44e   : > { %v9378_v60 = vadd.f32 %v9377_v53, %v9302_v45  ;;  %v9454_v17 = vadd.f32 %v9453_v3, %v9376_v51 }
 0x44f   : > { %v9527_v50 = vpop.f32.mrf.mxu1 }
 0x450   : > { %v9456_v13 = vadd.f32 %v9455_v35, %v9378_v60  ;;  %v9528_v61 = vadd.f32 %v9527_v50, %v9454_v17 }
 0x451   : > { %v9529_v28 = vpop.f32.mrf.mxu1 }
 0x452   : > { %v9532_v22 = vadd.f32 %v9528_v61, %v9046_v0  ;;  %v9530_v1 = vadd.f32 %v9529_v28, %v9456_v13 }
 0x454   : > { %v9534_v46 = vadd.f32 %v9532_v22, %v10972_v59  ;;  %v9533_v20 = vadd.f32 %v9530_v1, %v9047_v2 }
 0x456   : > { %v9535_v37 = vadd.f32 %v9533_v20, %v10973_v38  ;;  %v9536_v48 = vmax.f32 %v9534_v46, 0.0 }
 0x458   : > { %v9537_v15 = vmax.f32 %v9535_v37, 0.0 }
 0x45a   : > { %v9540_v30 = vcombine.low %v9536_v48, %v9537_v15 }
 0x45c   : > { %9542 = vst [vmem:[%s253_s24] sm:$0xff] %v9540_v30 }
 0x45d PF: > { %s16_s21 = sadd.s32 1, %s9667_s21  }
 0x45e   : > { %p13_p4 = scmp.ge.s32.totalorder %s16_s21, 4  }
 0x460   :  { %15 = sbr.rel (!%p13_p4) target bundleno = 1 (0x1), region = 90 }

</bundles_post_ra>
